<compile_context>
chip_gen: v7x
topology: tpu7x:2x2x1
jax: 0.10.0
libtpu: 0.0.40
codegen_flags: <defaults>
</compile_context>

<pallas_src>
import functools
import math

import jax
import jax.numpy as jnp
import numpy as np
from jax.experimental import pallas as pl
from jax.experimental.pallas import tpu as pltpu

_HIGHEST = jax.lax.Precision.HIGHEST
_LANES = 128                     # GCN hidden width (100) is zero-padded to this


# ----------------------------- shared math helpers -----------------------------
def _relu(x):
    return jnp.maximum(x, 0.0)


def _bn_train(x, beta, eps=1e-5):
    """BatchNorm1d, training-mode batch statistics, gamma == 1 (frozen)."""
    mean = jnp.mean(x, axis=0, keepdims=True)
    var = jnp.mean((x - mean) * (x - mean), axis=0, keepdims=True)
    return (x - mean) * jax.lax.rsqrt(var + eps) + beta


def _dot_f32(a, b):
    """Exact-ish f32 matmul for the small encoder/decoder projections."""
    return jnp.dot(a, b, preferred_element_type=jnp.float32, precision=_HIGHEST)


def _dot_bf16(a, b):
    """Single-MXU-pass matmul: bf16 inputs, f32 accumulate (review item)."""
    return jnp.dot(a.astype(jnp.bfloat16), b.astype(jnp.bfloat16),
                   preferred_element_type=jnp.float32)


def _softmax(x, *, approx):
    m = jnp.max(x, axis=-1, keepdims=True)
    e = jnp.exp(x - m)
    return e * pl.reciprocal(jnp.sum(e, axis=-1, keepdims=True), approx=approx)


# ------------------------------- fused kernel ----------------------------------
def _prodlda_kernel(
    x_ref, adjbd_ref, adjb_ref,                        # per-group graph inputs
    w1_ref, w2_ref, we1_ref, we2_ref, wmlv_ref, wdec_ref,  # weight matrices
    pk_ref, eps_ref,                                   # packed small params, noise
    recon_ref,                                         # (B, V) output
    g_ref,                                             # (B, V) VMEM scratch (carried)
    *, G, V, E1, E2, T,
):
    gid = pl.program_id(0)

    # -------- packed sub-vreg parameters: one (8,128) DMA, static slices --------
    b1 = pk_ref[0:1, :]                    # (1, Hp) gcn1 bias (zero-padded)
    b2 = pk_ref[1:2, :]                    # (1, Hp) gcn2 bias
    w3r = pk_ref[2:3, :]                   # (1, Hp) gcn3 weight as a row
    be1 = pk_ref[3:4, 0:E1]
    be2 = pk_ref[3:4, E1:E1 + E2]
    bmlv = pk_ref[4:5, 0:2 * T]            # [mean_fc.b | logvar_fc.b]
    bnm_beta = pk_ref[4:5, 2 * T:3 * T]
    bnlv_beta = pk_ref[4:5, 3 * T:4 * T]
    bndec_beta = pk_ref[4:5, 4 * T:4 * T + V]
    b3 = pk_ref[5:6, 0:1]                  # gcn3 scalar bias

    # ----------------------------- per-group GCN --------------------------------
    x = x_ref[...]                         # (G*V, V)  node features, row-stacked
    adj = adjbd_ref[...]                   # (G*V, G*V) block-diag within the group

    # gcn1 / gcn2: full-width (128-row) MXU matmuls, bf16 inputs, f32 accumulate.
    h1 = _relu(_dot_bf16(adj, _dot_bf16(x, w1_ref[...])) + b1)          # (+ w_drop: id)
    h2 = _relu(_dot_bf16(adj, _dot_bf16(h1, w2_ref[...])) + b2) + h1    # residual

    # gcn3 (narrow form, review item): reduce the hidden dim BEFORE applying the
    # adjacency.  v = rowsum(h2 * w3_row) is VPU + XLU; the adjacency is then
    # applied per graph with a broadcast-multiply + lane reduce — no MXU pass.
    v = jnp.sum((h2 * w3r).reshape(G, V, -1), axis=-1)                  # (G, V)
    u = jnp.sum(adjb_ref[...] * v[:, None, :], axis=-1)                 # (G, V)
    g_grp = _relu(u + b3)

    row0 = pl.multiple_of(gid * G, G)
    g_ref[pl.ds(row0, G), :] = g_grp       # stash this group's g (carried scratch)

    # --------- encoder / reparam / decoder: once, after the last group ---------
    # BatchNorm1d needs full-batch statistics, so this tail must see every
    # group's g — hence the sequential ("arbitrary") grid and the pl.when gate.
    @pl.when(gid == pl.num_programs(0) - 1)
    def _():
        g = g_ref[...]                                                  # (B, V)
        en1 = _relu(_dot_f32(g, we1_ref[...]) + be1)
        en2 = _relu(_dot_f32(en1, we2_ref[...]) + be2)
        # en2_drop: identity (see TODO at top of file).

        ml = _dot_f32(en2, wmlv_ref[...]) + bmlv       # fused mean|logvar proj (B, 2T)
        posterior_mean = _bn_train(ml[:, 0:T], bnm_beta)
        posterior_logvar = _bn_train(ml[:, T:2 * T], bnlv_beta)

        # exp(0.5 * logvar): one EUP transcendental, no overflow before sqrt.
        z = posterior_mean + jnp.exp(0.5 * posterior_logvar) * eps_ref[...]
        # Exact reciprocal here: decoder_bn re-amplifies any error in p, and the
        # tensor is only (B, T) — approx would save nothing measurable.
        p = _softmax(z, approx=False)
        # p_drop: identity (see TODO at top of file).

        recon_ref[...] = _softmax(
            _bn_train(_dot_f32(p, wdec_ref[...]), bndec_beta), approx=True)


# --------------------------------- wrapper --------------------------------------
@jax.jit
def prodlda_forward(x, adj, gcn_params, enc_params, eps):
    """x, adj: (B, V, V) float32. Returns recon: (B, V) float32."""
    w1, b1, w2, b2, w3, b3 = gcn_params
    (we1, be1, we2, be2, wm, bm, bnm_beta, wlv, blv, bnlv_beta,
     wdec, bndec_beta) = enc_params

    B, V, _ = x.shape
    H = w1.shape[1]
    E1, E2 = we1.shape[1], we2.shape[1]
    T = wm.shape[1]
    Hp = pl.cdiv(H, _LANES) * _LANES

    assert _LANES % V == 0, "V must divide 128 for the graph-group packing"
    G = _LANES // V                 # graphs per grid step -> 128-row MXU matmuls
    assert B % G == 0, "batch must be a multiple of the group size"
    NG = B // G
    GV = G * V
    assert Hp == _LANES and E1 + E2 <= _LANES and 4 * T + V <= _LANES

    # GCN weights zero-padded to the lane width (exact: padded columns of every
    # activation stay identically 0 through relu / residual / gcn3).
    w1p = jnp.pad(w1, ((0, 0), (0, Hp - H)))                  # (V, Hp)
    w2p = jnp.pad(w2, ((0, Hp - H), (0, Hp - H)))             # (Hp, Hp)

    # mean_fc / logvar_fc fused into one projection (review item).
    wmlv = jnp.concatenate([wm, wlv], axis=1)                 # (E2, 2T)

    # Pack every sub-vreg bias / BN beta / scalar into ONE (8,128) buffer so they
    # arrive in a single DMA instead of ~15 tiny masked ones (review item).
    def _row(v):
        return jnp.pad(v.reshape(1, -1), ((0, 0), (0, _LANES - v.size)))

    packed = jnp.concatenate([
        _row(b1),                                              # row 0
        _row(b2),                                              # row 1
        _row(w3.T),                                            # row 2: gcn3 weight
        _row(jnp.concatenate([be1, be2], axis=1)),             # row 3
        _row(jnp.concatenate([bm, blv, bnm_beta, bnlv_beta, bndec_beta], axis=1)),
        _row(b3),                                              # row 5
        jnp.zeros((2, _LANES), jnp.float32),                   # rows 6-7 (pad)
    ], axis=0)                                                 # (8, 128)

    # Per-group inputs: node features, a per-group block-diagonal adjacency
    # (linear in B — replaces the old global (B*V)^2 block-diag), and the raw
    # batched adjacency used by the MXU-free gcn3 step.
    x_grp = x.reshape(NG, GV, V)
    adj_grp = adj.reshape(NG, G, V, V)
    eye_g = jnp.eye(G, dtype=adj.dtype)
    adj_bd = (adj.reshape(NG, G, V, 1, V) *
              eye_g[None, :, None, :, None]).reshape(NG, GV, GV)

    kernel = functools.partial(_prodlda_kernel, G=G, V=V, E1=E1, E2=E2, T=T)
    const = lambda g: (0, 0)

    return pl.pallas_call(
        kernel,
        out_shape=jax.ShapeDtypeStruct((B, V), jnp.float32),
        grid=(NG,),
        in_specs=[
            pl.BlockSpec((None, GV, V), lambda g: (g, 0, 0)),      # x groups
            pl.BlockSpec((None, GV, GV), lambda g: (g, 0, 0)),     # block-diag adj
            pl.BlockSpec((None, G, V, V), lambda g: (g, 0, 0, 0)),  # batched adj (gcn3)
            pl.BlockSpec((V, Hp), const),                          # w1p
            pl.BlockSpec((Hp, Hp), const),                         # w2p
            pl.BlockSpec((V, E1), const),                          # we1
            pl.BlockSpec((E1, E2), const),                         # we2
            pl.BlockSpec((E2, 2 * T), const),                      # wm|wlv fused
            pl.BlockSpec((T, V), const),                           # decoder
            pl.BlockSpec((8, _LANES), const),                      # packed small params
            pl.BlockSpec((B, T), const),                           # eps
        ],
        out_specs=pl.BlockSpec((B, V), const),    # resident across the grid
        scratch_shapes=[pltpu.VMEM((B, V), jnp.float32)],          # carried g
        compiler_params=pltpu.CompilerParams(
            # "arbitrary": the carried g scratch + full-batch BatchNorm couple the
            # groups (see kernel).  Per-step VMEM use is ~1 MiB, far under every
            # generation's budget (incl. v7x's 64 MiB); limit kept explicit so the
            # budget stays visible if V / group size is ever scaled up.
            dimension_semantics=("arbitrary",),
            vmem_limit_bytes=32 * 1024 * 1024,
        ),
    )(x_grp, adj_bd, adj_grp, w1p, w2p, we1, we2, wmlv, wdec, packed, eps)


# ------------------------------ pure-JAX reference -----------------------------
def reference_forward(x, adj, gcn_params, enc_params, eps):
    """Pure-JAX reference mirroring the PyTorch module op-for-op.

    The dominant GCN matmuls apply the same bf16-input / f32-accumulate rounding
    as the kernel (review-endorsed precision), so only accumulation-order
    differences remain and the tolerance can stay tight."""
    w1, b1, w2, b2, w3, b3 = gcn_params
    (we1, be1, we2, be2, wm, bm, bnm_beta, wlv, blv, bnlv_beta,
     wdec, bndec_beta) = enc_params

    bf = lambda a: a.astype(jnp.bfloat16)
    ein_bf = lambda s, a, b: jnp.einsum(s, bf(a), bf(b),
                                        preferred_element_type=jnp.float32)
    ein_hi = lambda s, a, b: jnp.einsum(s, a, b, precision=_HIGHEST)

    def softmax(v):
        m = jnp.max(v, axis=-1, keepdims=True)
        e = jnp.exp(v - m)
        return e / jnp.sum(e, axis=-1, keepdims=True)

    xw1 = ein_bf('bij,jk->bik', x, w1)
    h1 = _relu(ein_bf('bij,bjk->bik', adj, xw1) + b1)
    hw2 = ein_bf('bij,jk->bik', h1, w2)
    h2 = _relu(ein_bf('bij,bjk->bik', adj, hw2) + b2) + h1
    hw3 = ein_hi('bij,jk->bik', h2, w3)
    g = _relu(ein_hi('bij,bjk->bik', adj, hw3) + b3)[..., 0]

    en1 = _relu(_dot_f32(g, we1) + be1)
    en2 = _relu(_dot_f32(en1, we2) + be2)
    pm = _bn_train(_dot_f32(en2, wm) + bm, bnm_beta)
    plv = _bn_train(_dot_f32(en2, wlv) + blv, bnlv_beta)
    posterior_var = jnp.exp(plv)
    z = pm + jnp.sqrt(posterior_var) * eps
    p = softmax(z)
    return softmax(_bn_train(_dot_f32(p, wdec), bndec_beta))


# ------------------------------------ main --------------------------------------
def _xavier(key, shape):
    fan_in, fan_out = shape
    std = math.sqrt(2.0 / (fan_in + fan_out))
    return std * jax.random.normal(key, shape, jnp.float32)


if __name__ == "__main__":
    # Small shapes consistent with the module.  B=8, V=32 -> 2 graph-groups of 4,
    # which exercises the grid loop and the carried g scratch.
    B = 8      # number of graphs
    V = 32     # num_input (== nodes per graph)
    H = 100    # GCN hidden width (fixed by the module; padded to 128 in wrapper)
    E1 = 64    # en1_units
    E2 = 64    # en2_units
    T = 16     # num_topic

    key = jax.random.PRNGKey(0)
    keys = jax.random.split(key, 24)

    # Graph inputs: node features and row-normalized adjacency.
    x = jax.random.normal(keys[0], (B, V, V), jnp.float32)
    adj_raw = jax.random.uniform(keys[1], (B, V, V), jnp.float32)
    adj = adj_raw / jnp.sum(adj_raw, axis=-1, keepdims=True)

    # GCN params (weights (in, out); biases (1, out)); non-zero biases / betas so
    # the numerical check actually exercises them.
    w1 = _xavier(keys[2], (V, H)); b1 = 0.1 * jax.random.normal(keys[11], (1, H), jnp.float32)
    w2 = _xavier(keys[3], (H, H)); b2 = 0.1 * jax.random.normal(keys[12], (1, H), jnp.float32)
    w3 = _xavier(keys[4], (H, 1)); b3 = 0.1 * jax.random.normal(keys[13], (1, 1), jnp.float32)
    gcn_params = (w1, b1, w2, b2, w3, b3)

    we1 = _xavier(keys[5], (V, E1));  be1 = 0.1 * jax.random.normal(keys[14], (1, E1), jnp.float32)
    we2 = _xavier(keys[6], (E1, E2)); be2 = 0.1 * jax.random.normal(keys[15], (1, E2), jnp.float32)
    wm = _xavier(keys[7], (E2, T));   bm = 0.1 * jax.random.normal(keys[16], (1, T), jnp.float32)
    bnm_beta = 0.1 * jax.random.normal(keys[17], (1, T), jnp.float32)     # mean_bn bias
    wlv = _xavier(keys[8], (E2, T));  blv = 0.1 * jax.random.normal(keys[18], (1, T), jnp.float32)
    bnlv_beta = 0.1 * jax.random.normal(keys[19], (1, T), jnp.float32)    # logvar_bn bias
    wdec = _xavier(keys[9], (T, V))                                       # decoder (no bias)
    bndec_beta = 0.1 * jax.random.normal(keys[20], (1, V), jnp.float32)   # decoder_bn bias
    enc_params = (we1, be1, we2, be2, wm, bm, bnm_beta, wlv, blv, bnlv_beta,
                  wdec, bndec_beta)

    # Reparameterization noise (deterministic, host-generated).
    eps = jax.random.normal(keys[10], (B, T), jnp.float32)

    recon = jax.block_until_ready(
        prodlda_forward(x, adj, gcn_params, enc_params, eps))
    ref = jax.block_until_ready(
        reference_forward(x, adj, gcn_params, enc_params, eps))

    # Error budget: bf16 GCN matmul rounding is matched on both sides, so the
    # kernel-vs-reference gap is f32 accumulation order (+BN amplification) plus
    # the approx EUP reciprocal of the final softmax (<= ~2^-11 relative).
    np.testing.assert_allclose(np.asarray(recon), np.asarray(ref),
                               rtol=5e-3, atol=2e-4)
    assert recon.shape == (B, V)
    print("KERNEL_OK")
</pallas_src>

<mosaic_0001>
module attributes {stable_mosaic.version = 11 : i64} {
  func.func @_prodlda_kernel(%arg0: i32, %arg1: memref<1x128x32xf32, #tpu.memory_space<vmem>>, %arg2: memref<1x128x128xf32, #tpu.memory_space<vmem>>, %arg3: memref<1x4x32x32xf32, #tpu.memory_space<vmem>>, %arg4: memref<32x128xf32, #tpu.memory_space<vmem>>, %arg5: memref<128x128xf32, #tpu.memory_space<vmem>>, %arg6: memref<32x64xf32, #tpu.memory_space<vmem>>, %arg7: memref<64x64xf32, #tpu.memory_space<vmem>>, %arg8: memref<64x32xf32, #tpu.memory_space<vmem>>, %arg9: memref<16x32xf32, #tpu.memory_space<vmem>>, %arg10: memref<8x128xf32, #tpu.memory_space<vmem>>, %arg11: memref<8x16xf32, #tpu.memory_space<vmem>>, %arg12: memref<8x32xf32, #tpu.memory_space<vmem>>, %arg13: memref<8x32xf32, #tpu.memory_space<vmem>>) attributes {dimension_semantics = [#tpu.dimension_semantics<arbitrary>], iteration_bounds = array<i64: 2>, scalar_prefetch = 0 : i64, scratch_operands = 1 : i64, tpu.core_type = #tpu.core_type<tc>, window_params = [{transform_indices = @transform_0, window_bounds = array<i64: 1, 128, 32>}, {transform_indices = @transform_1, window_bounds = array<i64: 1, 128, 128>}, {transform_indices = @transform_2, window_bounds = array<i64: 1, 4, 32, 32>}, {pipeline_mode = #tpu.pipeline_mode<synchronous>, transform_indices = @transform_3, window_bounds = array<i64: 32, 128>}, {pipeline_mode = #tpu.pipeline_mode<synchronous>, transform_indices = @transform_4, window_bounds = array<i64: 128, 128>}, {pipeline_mode = #tpu.pipeline_mode<synchronous>, transform_indices = @transform_5, window_bounds = array<i64: 32, 64>}, {pipeline_mode = #tpu.pipeline_mode<synchronous>, transform_indices = @transform_6, window_bounds = array<i64: 64, 64>}, {pipeline_mode = #tpu.pipeline_mode<synchronous>, transform_indices = @transform_7, window_bounds = array<i64: 64, 32>}, {pipeline_mode = #tpu.pipeline_mode<synchronous>, transform_indices = @transform_8, window_bounds = array<i64: 16, 32>}, {pipeline_mode = #tpu.pipeline_mode<synchronous>, transform_indices = @transform_9, window_bounds = array<i64: 8, 128>}, {pipeline_mode = #tpu.pipeline_mode<synchronous>, transform_indices = @transform_10, window_bounds = array<i64: 8, 16>}, {pipeline_mode = #tpu.pipeline_mode<synchronous>, transform_indices = @transform_11, window_bounds = array<i64: 8, 32>}]} {
    %c0 = arith.constant 0 : index
    %c0_0 = arith.constant 0 : index
    %0 = vector.load %arg10[%c0, %c0_0] : memref<8x128xf32, #tpu.memory_space<vmem>>, vector<1x128xf32>
    %c1 = arith.constant 1 : index
    %c0_1 = arith.constant 0 : index
    %1 = vector.load %arg10[%c1, %c0_1] : memref<8x128xf32, #tpu.memory_space<vmem>>, vector<1x128xf32>
    %c2 = arith.constant 2 : index
    %c0_2 = arith.constant 0 : index
    %2 = vector.load %arg10[%c2, %c0_2] : memref<8x128xf32, #tpu.memory_space<vmem>>, vector<1x128xf32>
    %c3 = arith.constant 3 : index
    %c0_3 = arith.constant 0 : index
    %3 = vector.load %arg10[%c3, %c0_3] : memref<8x128xf32, #tpu.memory_space<vmem>>, vector<1x64xf32>
    %c3_4 = arith.constant 3 : index
    %c64 = arith.constant 64 : index
    %4 = vector.load %arg10[%c3_4, %c64] : memref<8x128xf32, #tpu.memory_space<vmem>>, vector<1x64xf32>
    %c4 = arith.constant 4 : index
    %c0_5 = arith.constant 0 : index
    %5 = vector.load %arg10[%c4, %c0_5] : memref<8x128xf32, #tpu.memory_space<vmem>>, vector<1x32xf32>
    %c4_6 = arith.constant 4 : index
    %c32 = arith.constant 32 : index
    %6 = vector.load %arg10[%c4_6, %c32] : memref<8x128xf32, #tpu.memory_space<vmem>>, vector<1x16xf32>
    %c4_7 = arith.constant 4 : index
    %c48 = arith.constant 48 : index
    %7 = vector.load %arg10[%c4_7, %c48] : memref<8x128xf32, #tpu.memory_space<vmem>>, vector<1x16xf32>
    %c4_8 = arith.constant 4 : index
    %c64_9 = arith.constant 64 : index
    %8 = vector.load %arg10[%c4_8, %c64_9] : memref<8x128xf32, #tpu.memory_space<vmem>>, vector<1x32xf32>
    %c5 = arith.constant 5 : index
    %c0_10 = arith.constant 0 : index
    %9 = vector.load %arg10[%c5, %c0_10] : memref<8x128xf32, #tpu.memory_space<vmem>>, vector<1x1xf32>
    %c0_11 = arith.constant 0 : index
    %c0_12 = arith.constant 0 : index
    %c0_13 = arith.constant 0 : index
    %10 = vector.load %arg1[%c0_11, %c0_12, %c0_13] : memref<1x128x32xf32, #tpu.memory_space<vmem>>, vector<1x128x32xf32>
    %11 = vector.shape_cast %10 : vector<1x128x32xf32> to vector<128x32xf32>
    %c0_14 = arith.constant 0 : index
    %c0_15 = arith.constant 0 : index
    %c0_16 = arith.constant 0 : index
    %12 = vector.load %arg2[%c0_14, %c0_15, %c0_16] : memref<1x128x128xf32, #tpu.memory_space<vmem>>, vector<1x128x128xf32>
    %13 = vector.shape_cast %12 : vector<1x128x128xf32> to vector<128x128xf32>
    %c0_17 = arith.constant 0 : index
    %c0_18 = arith.constant 0 : index
    %14 = vector.load %arg4[%c0_17, %c0_18] : memref<32x128xf32, #tpu.memory_space<vmem>>, vector<32x128xf32>
    %15 = arith.truncf %11 : vector<128x32xf32> to vector<128x32xbf16>
    %16 = arith.truncf %14 : vector<32x128xf32> to vector<32x128xbf16>
    %cst = arith.constant dense<0.000000e+00> : vector<128x128xf32>
    %17 = tpu.matmul %15, %16, %cst {dimension_numbers = #tpu.dot_dimension_numbers<[1], [0], [0], [1], [0, 0, 1, 1], [], []>} : vector<128x32xbf16>, vector<32x128xbf16>, vector<128x128xf32> -> vector<128x128xf32>
    %18 = arith.truncf %13 : vector<128x128xf32> to vector<128x128xbf16>
    %19 = arith.truncf %17 : vector<128x128xf32> to vector<128x128xbf16>
    %cst_19 = arith.constant dense<0.000000e+00> : vector<128x128xf32>
    %20 = tpu.matmul %18, %19, %cst_19 {dimension_numbers = #tpu.dot_dimension_numbers<[1], [0], [0], [1], [0, 0, 1, 1], [], []>} : vector<128x128xbf16>, vector<128x128xbf16>, vector<128x128xf32> -> vector<128x128xf32>
    %21 = vector.broadcast %0 : vector<1x128xf32> to vector<128x128xf32>
    %22 = arith.addf %20, %21 : vector<128x128xf32>
    %cst_20 = arith.constant 0.000000e+00 : f32
    %23 = vector.broadcast %cst_20 : f32 to vector<128x128xf32>
    %24 = arith.maximumf %22, %23 : vector<128x128xf32>
    %c0_21 = arith.constant 0 : index
    %c0_22 = arith.constant 0 : index
    %25 = vector.load %arg5[%c0_21, %c0_22] : memref<128x128xf32, #tpu.memory_space<vmem>>, vector<128x128xf32>
    %26 = arith.truncf %24 : vector<128x128xf32> to vector<128x128xbf16>
    %27 = arith.truncf %25 : vector<128x128xf32> to vector<128x128xbf16>
    %cst_23 = arith.constant dense<0.000000e+00> : vector<128x128xf32>
    %28 = tpu.matmul %26, %27, %cst_23 {dimension_numbers = #tpu.dot_dimension_numbers<[1], [0], [0], [1], [0, 0, 1, 1], [], []>} : vector<128x128xbf16>, vector<128x128xbf16>, vector<128x128xf32> -> vector<128x128xf32>
    %29 = arith.truncf %13 : vector<128x128xf32> to vector<128x128xbf16>
    %30 = arith.truncf %28 : vector<128x128xf32> to vector<128x128xbf16>
    %cst_24 = arith.constant dense<0.000000e+00> : vector<128x128xf32>
    %31 = tpu.matmul %29, %30, %cst_24 {dimension_numbers = #tpu.dot_dimension_numbers<[1], [0], [0], [1], [0, 0, 1, 1], [], []>} : vector<128x128xbf16>, vector<128x128xbf16>, vector<128x128xf32> -> vector<128x128xf32>
    %32 = vector.broadcast %1 : vector<1x128xf32> to vector<128x128xf32>
    %33 = arith.addf %31, %32 : vector<128x128xf32>
    %cst_25 = arith.constant 0.000000e+00 : f32
    %34 = vector.broadcast %cst_25 : f32 to vector<128x128xf32>
    %35 = arith.maximumf %33, %34 : vector<128x128xf32>
    %36 = arith.addf %35, %24 : vector<128x128xf32>
    %37 = vector.broadcast %2 : vector<1x128xf32> to vector<128x128xf32>
    %38 = arith.mulf %36, %37 : vector<128x128xf32>
    %39 = vector.shape_cast %38 : vector<128x128xf32> to vector<4x32x128xf32>
    %cst_26 = arith.constant dense<0.000000e+00> : vector<4x32xf32>
    %40 = vector.multi_reduction <add>, %39, %cst_26 [2] : vector<4x32x128xf32> to vector<4x32xf32>
    %c0_27 = arith.constant 0 : index
    %c0_28 = arith.constant 0 : index
    %c0_29 = arith.constant 0 : index
    %c0_30 = arith.constant 0 : index
    %41 = vector.load %arg3[%c0_27, %c0_28, %c0_29, %c0_30] : memref<1x4x32x32xf32, #tpu.memory_space<vmem>>, vector<1x4x32x32xf32>
    %42 = vector.shape_cast %41 : vector<1x4x32x32xf32> to vector<4x32x32xf32>
    %43 = vector.shape_cast %40 : vector<4x32xf32> to vector<4x1x32xf32>
    %44 = vector.broadcast %43 : vector<4x1x32xf32> to vector<4x32x32xf32>
    %45 = arith.mulf %42, %44 : vector<4x32x32xf32>
    %cst_31 = arith.constant dense<0.000000e+00> : vector<4x32xf32>
    %46 = vector.multi_reduction <add>, %45, %cst_31 [2] : vector<4x32x32xf32> to vector<4x32xf32>
    %47 = vector.broadcast %9 : vector<1x1xf32> to vector<4x32xf32>
    %48 = arith.addf %46, %47 : vector<4x32xf32>
    %cst_32 = arith.constant 0.000000e+00 : f32
    %49 = vector.broadcast %cst_32 : f32 to vector<4x32xf32>
    %50 = arith.maximumf %48, %49 : vector<4x32xf32>
    %c4_i32 = arith.constant 4 : i32
    %51 = arith.muli %arg0, %c4_i32 : i32
    %52 = tpu.assume_multiple %51, 4 : i32
    %53 = arith.index_cast %52 : i32 to index
    %c0_33 = arith.constant 0 : index
    %54 = vector.load %arg13[%53, %c0_33] : memref<8x32xf32, #tpu.memory_space<vmem>>, vector<4x32xf32>
    tpu.vector_store %arg13[%53, %c0_33], %50 {strides = array<i32>} : memref<8x32xf32, #tpu.memory_space<vmem>>, vector<4x32xf32>,
    %c1_i32 = arith.constant 1 : i32
    %55 = arith.cmpi eq, %arg0, %c1_i32 : i32
    %56 = arith.extui %55 : i1 to i32
    %c0_i32 = arith.constant 0 : i32
    %57 = arith.cmpi ne, %56, %c0_i32 : i32
    scf.if %57 {
      %c0_34 = arith.constant 0 : index
      %c0_35 = arith.constant 0 : index
      %58 = vector.load %arg13[%c0_34, %c0_35] : memref<8x32xf32, #tpu.memory_space<vmem>>, vector<8x32xf32>
      %c0_36 = arith.constant 0 : index
      %c0_37 = arith.constant 0 : index
      %59 = vector.load %arg6[%c0_36, %c0_37] : memref<32x64xf32, #tpu.memory_space<vmem>>, vector<32x64xf32>
      %cst_38 = arith.constant dense<0.000000e+00> : vector<8x64xf32>
      %60 = tpu.matmul %58, %59, %cst_38 {dimension_numbers = #tpu.dot_dimension_numbers<[1], [0], [0], [1], [0, 0, 1, 1], [], []>, precision = #tpu.contract_precision<fp32>} : vector<8x32xf32>, vector<32x64xf32>, vector<8x64xf32> -> vector<8x64xf32>
      %61 = vector.broadcast %3 : vector<1x64xf32> to vector<8x64xf32>
      %62 = arith.addf %60, %61 : vector<8x64xf32>
      %cst_39 = arith.constant 0.000000e+00 : f32
      %63 = vector.broadcast %cst_39 : f32 to vector<8x64xf32>
      %64 = arith.maximumf %62, %63 : vector<8x64xf32>
      %c0_40 = arith.constant 0 : index
      %c0_41 = arith.constant 0 : index
      %65 = vector.load %arg7[%c0_40, %c0_41] : memref<64x64xf32, #tpu.memory_space<vmem>>, vector<64x64xf32>
      %cst_42 = arith.constant dense<0.000000e+00> : vector<8x64xf32>
      %66 = tpu.matmul %64, %65, %cst_42 {dimension_numbers = #tpu.dot_dimension_numbers<[1], [0], [0], [1], [0, 0, 1, 1], [], []>, precision = #tpu.contract_precision<fp32>} : vector<8x64xf32>, vector<64x64xf32>, vector<8x64xf32> -> vector<8x64xf32>
      %67 = vector.broadcast %4 : vector<1x64xf32> to vector<8x64xf32>
      %68 = arith.addf %66, %67 : vector<8x64xf32>
      %cst_43 = arith.constant 0.000000e+00 : f32
      %69 = vector.broadcast %cst_43 : f32 to vector<8x64xf32>
      %70 = arith.maximumf %68, %69 : vector<8x64xf32>
      %c0_44 = arith.constant 0 : index
      %c0_45 = arith.constant 0 : index
      %71 = vector.load %arg8[%c0_44, %c0_45] : memref<64x32xf32, #tpu.memory_space<vmem>>, vector<64x32xf32>
      %cst_46 = arith.constant dense<0.000000e+00> : vector<8x32xf32>
      %72 = tpu.matmul %70, %71, %cst_46 {dimension_numbers = #tpu.dot_dimension_numbers<[1], [0], [0], [1], [0, 0, 1, 1], [], []>, precision = #tpu.contract_precision<fp32>} : vector<8x64xf32>, vector<64x32xf32>, vector<8x32xf32> -> vector<8x32xf32>
      %73 = vector.broadcast %5 : vector<1x32xf32> to vector<8x32xf32>
      %74 = arith.addf %72, %73 : vector<8x32xf32>
      %75 = vector.extract_strided_slice %74 {offsets = [0, 0], sizes = [8, 16], strides = [1, 1]} : vector<8x32xf32> to vector<8x16xf32>
      %cst_47 = arith.constant dense<0.000000e+00> : vector<16xf32>
      %76 = vector.multi_reduction <add>, %75, %cst_47 [0] : vector<8x16xf32> to vector<16xf32>
      %77 = vector.shape_cast %76 : vector<16xf32> to vector<1x16xf32>
      %cst_48 = arith.constant 8.000000e+00 : f32
      %78 = vector.broadcast %cst_48 : f32 to vector<1x16xf32>
      %79 = arith.divf %77, %78 : vector<1x16xf32>
      %80 = vector.broadcast %79 : vector<1x16xf32> to vector<8x16xf32>
      %81 = arith.subf %75, %80 : vector<8x16xf32>
      %82 = vector.broadcast %79 : vector<1x16xf32> to vector<8x16xf32>
      %83 = arith.subf %75, %82 : vector<8x16xf32>
      %84 = arith.mulf %81, %83 : vector<8x16xf32>
      %cst_49 = arith.constant dense<0.000000e+00> : vector<16xf32>
      %85 = vector.multi_reduction <add>, %84, %cst_49 [0] : vector<8x16xf32> to vector<16xf32>
      %86 = vector.shape_cast %85 : vector<16xf32> to vector<1x16xf32>
      %cst_50 = arith.constant 8.000000e+00 : f32
      %87 = vector.broadcast %cst_50 : f32 to vector<1x16xf32>
      %88 = arith.divf %86, %87 : vector<1x16xf32>
      %89 = vector.broadcast %79 : vector<1x16xf32> to vector<8x16xf32>
      %90 = arith.subf %75, %89 : vector<8x16xf32>
      %cst_51 = arith.constant 9.99999974E-6 : f32
      %91 = vector.broadcast %cst_51 : f32 to vector<1x16xf32>
      %92 = arith.addf %88, %91 : vector<1x16xf32>
      %93 = math.rsqrt %92 : vector<1x16xf32>
      %94 = vector.broadcast %93 : vector<1x16xf32> to vector<8x16xf32>
      %95 = arith.mulf %90, %94 : vector<8x16xf32>
      %96 = vector.broadcast %6 : vector<1x16xf32> to vector<8x16xf32>
      %97 = arith.addf %95, %96 : vector<8x16xf32>
      %98 = vector.extract_strided_slice %74 {offsets = [0, 16], sizes = [8, 16], strides = [1, 1]} : vector<8x32xf32> to vector<8x16xf32>
      %cst_52 = arith.constant dense<0.000000e+00> : vector<16xf32>
      %99 = vector.multi_reduction <add>, %98, %cst_52 [0] : vector<8x16xf32> to vector<16xf32>
      %100 = vector.shape_cast %99 : vector<16xf32> to vector<1x16xf32>
      %cst_53 = arith.constant 8.000000e+00 : f32
      %101 = vector.broadcast %cst_53 : f32 to vector<1x16xf32>
      %102 = arith.divf %100, %101 : vector<1x16xf32>
      %103 = vector.broadcast %102 : vector<1x16xf32> to vector<8x16xf32>
      %104 = arith.subf %98, %103 : vector<8x16xf32>
      %105 = vector.broadcast %102 : vector<1x16xf32> to vector<8x16xf32>
      %106 = arith.subf %98, %105 : vector<8x16xf32>
      %107 = arith.mulf %104, %106 : vector<8x16xf32>
      %cst_54 = arith.constant dense<0.000000e+00> : vector<16xf32>
      %108 = vector.multi_reduction <add>, %107, %cst_54 [0] : vector<8x16xf32> to vector<16xf32>
      %109 = vector.shape_cast %108 : vector<16xf32> to vector<1x16xf32>
      %cst_55 = arith.constant 8.000000e+00 : f32
      %110 = vector.broadcast %cst_55 : f32 to vector<1x16xf32>
      %111 = arith.divf %109, %110 : vector<1x16xf32>
      %112 = vector.broadcast %102 : vector<1x16xf32> to vector<8x16xf32>
      %113 = arith.subf %98, %112 : vector<8x16xf32>
      %cst_56 = arith.constant 9.99999974E-6 : f32
      %114 = vector.broadcast %cst_56 : f32 to vector<1x16xf32>
      %115 = arith.addf %111, %114 : vector<1x16xf32>
      %116 = math.rsqrt %115 : vector<1x16xf32>
      %117 = vector.broadcast %116 : vector<1x16xf32> to vector<8x16xf32>
      %118 = arith.mulf %113, %117 : vector<8x16xf32>
      %119 = vector.broadcast %7 : vector<1x16xf32> to vector<8x16xf32>
      %120 = arith.addf %118, %119 : vector<8x16xf32>
      %cst_57 = arith.constant 5.000000e-01 : f32
      %121 = vector.broadcast %cst_57 : f32 to vector<8x16xf32>
      %122 = arith.mulf %121, %120 : vector<8x16xf32>
      %123 = math.exp %122 : vector<8x16xf32>
      %c0_58 = arith.constant 0 : index
      %c0_59 = arith.constant 0 : index
      %124 = vector.load %arg11[%c0_58, %c0_59] : memref<8x16xf32, #tpu.memory_space<vmem>>, vector<8x16xf32>
      %125 = arith.mulf %123, %124 : vector<8x16xf32>
      %126 = arith.addf %97, %125 : vector<8x16xf32>
      %cst_60 = arith.constant dense<0xFF800000> : vector<8xf32>
      %127 = vector.multi_reduction <maximumf>, %126, %cst_60 [1] : vector<8x16xf32> to vector<8xf32>
      %128 = vector.shape_cast %127 : vector<8xf32> to vector<8x1xf32>
      %129 = vector.broadcast %128 : vector<8x1xf32> to vector<8x16xf32>
      %130 = arith.subf %126, %129 : vector<8x16xf32>
      %131 = math.exp %130 : vector<8x16xf32>
      %cst_61 = arith.constant dense<0.000000e+00> : vector<8xf32>
      %132 = vector.multi_reduction <add>, %131, %cst_61 [1] : vector<8x16xf32> to vector<8xf32>
      %133 = vector.shape_cast %132 : vector<8xf32> to vector<8x1xf32>
      %134 = tpu.reciprocal %133 : vector<8x1xf32> -> vector<8x1xf32>
      %135 = vector.broadcast %134 : vector<8x1xf32> to vector<8x16xf32>
      %136 = arith.mulf %131, %135 : vector<8x16xf32>
      %c0_62 = arith.constant 0 : index
      %c0_63 = arith.constant 0 : index
      %137 = vector.load %arg9[%c0_62, %c0_63] : memref<16x32xf32, #tpu.memory_space<vmem>>, vector<16x32xf32>
      %cst_64 = arith.constant dense<0.000000e+00> : vector<8x32xf32>
      %138 = tpu.matmul %136, %137, %cst_64 {dimension_numbers = #tpu.dot_dimension_numbers<[1], [0], [0], [1], [0, 0, 1, 1], [], []>, precision = #tpu.contract_precision<fp32>} : vector<8x16xf32>, vector<16x32xf32>, vector<8x32xf32> -> vector<8x32xf32>
      %cst_65 = arith.constant dense<0.000000e+00> : vector<32xf32>
      %139 = vector.multi_reduction <add>, %138, %cst_65 [0] : vector<8x32xf32> to vector<32xf32>
      %140 = vector.shape_cast %139 : vector<32xf32> to vector<1x32xf32>
      %cst_66 = arith.constant 8.000000e+00 : f32
      %141 = vector.broadcast %cst_66 : f32 to vector<1x32xf32>
      %142 = arith.divf %140, %141 : vector<1x32xf32>
      %143 = vector.broadcast %142 : vector<1x32xf32> to vector<8x32xf32>
      %144 = arith.subf %138, %143 : vector<8x32xf32>
      %145 = vector.broadcast %142 : vector<1x32xf32> to vector<8x32xf32>
      %146 = arith.subf %138, %145 : vector<8x32xf32>
      %147 = arith.mulf %144, %146 : vector<8x32xf32>
      %cst_67 = arith.constant dense<0.000000e+00> : vector<32xf32>
      %148 = vector.multi_reduction <add>, %147, %cst_67 [0] : vector<8x32xf32> to vector<32xf32>
      %149 = vector.shape_cast %148 : vector<32xf32> to vector<1x32xf32>
      %cst_68 = arith.constant 8.000000e+00 : f32
      %150 = vector.broadcast %cst_68 : f32 to vector<1x32xf32>
      %151 = arith.divf %149, %150 : vector<1x32xf32>
      %152 = vector.broadcast %142 : vector<1x32xf32> to vector<8x32xf32>
      %153 = arith.subf %138, %152 : vector<8x32xf32>
      %cst_69 = arith.constant 9.99999974E-6 : f32
      %154 = vector.broadcast %cst_69 : f32 to vector<1x32xf32>
      %155 = arith.addf %151, %154 : vector<1x32xf32>
      %156 = math.rsqrt %155 : vector<1x32xf32>
      %157 = vector.broadcast %156 : vector<1x32xf32> to vector<8x32xf32>
      %158 = arith.mulf %153, %157 : vector<8x32xf32>
      %159 = vector.broadcast %8 : vector<1x32xf32> to vector<8x32xf32>
      %160 = arith.addf %158, %159 : vector<8x32xf32>
      %cst_70 = arith.constant dense<0xFF800000> : vector<8xf32>
      %161 = vector.multi_reduction <maximumf>, %160, %cst_70 [1] : vector<8x32xf32> to vector<8xf32>
      %162 = vector.shape_cast %161 : vector<8xf32> to vector<8x1xf32>
      %163 = vector.broadcast %162 : vector<8x1xf32> to vector<8x32xf32>
      %164 = arith.subf %160, %163 : vector<8x32xf32>
      %165 = math.exp %164 : vector<8x32xf32>
      %cst_71 = arith.constant dense<0.000000e+00> : vector<8xf32>
      %166 = vector.multi_reduction <add>, %165, %cst_71 [1] : vector<8x32xf32> to vector<8xf32>
      %167 = vector.shape_cast %166 : vector<8xf32> to vector<8x1xf32>
      %168 = tpu.reciprocal %167 {approx = true} : vector<8x1xf32> -> vector<8x1xf32>
      %169 = vector.broadcast %168 : vector<8x1xf32> to vector<8x32xf32>
      %170 = arith.mulf %165, %169 : vector<8x32xf32>
      %c0_72 = arith.constant 0 : index
      %c0_73 = arith.constant 0 : index
      %171 = vector.load %arg12[%c0_72, %c0_73] : memref<8x32xf32, #tpu.memory_space<vmem>>, vector<8x32xf32>
      tpu.vector_store %arg12[%c0_72, %c0_73], %170 {strides = array<i32>} : memref<8x32xf32, #tpu.memory_space<vmem>>, vector<8x32xf32>,
    } else {
    }
    return
  }
  func.func @transform_0(%arg0: i32) -> (i32, i32, i32) {
    %c0_i32 = arith.constant 0 : i32
    %c0_i32_0 = arith.constant 0 : i32
    %c0_i32_1 = arith.constant 0 : i32
    return %arg0, %c0_i32, %c0_i32_0 : i32, i32, i32
  }
  func.func @transform_1(%arg0: i32) -> (i32, i32, i32) {
    %c0_i32 = arith.constant 0 : i32
    %c0_i32_0 = arith.constant 0 : i32
    %c0_i32_1 = arith.constant 0 : i32
    return %arg0, %c0_i32, %c0_i32_0 : i32, i32, i32
  }
  func.func @transform_2(%arg0: i32) -> (i32, i32, i32, i32) {
    %c0_i32 = arith.constant 0 : i32
    %c0_i32_0 = arith.constant 0 : i32
    %c0_i32_1 = arith.constant 0 : i32
    %c0_i32_2 = arith.constant 0 : i32
    return %arg0, %c0_i32, %c0_i32_0, %c0_i32_1 : i32, i32, i32, i32
  }
  func.func @transform_3(%arg0: i32) -> (i32, i32) {
    %c0_i32 = arith.constant 0 : i32
    %c0_i32_0 = arith.constant 0 : i32
    %c0_i32_1 = arith.constant 0 : i32
    return %c0_i32, %c0_i32_0 : i32, i32
  }
  func.func @transform_4(%arg0: i32) -> (i32, i32) {
    %c0_i32 = arith.constant 0 : i32
    %c0_i32_0 = arith.constant 0 : i32
    %c0_i32_1 = arith.constant 0 : i32
    return %c0_i32, %c0_i32_0 : i32, i32
  }
  func.func @transform_5(%arg0: i32) -> (i32, i32) {
    %c0_i32 = arith.constant 0 : i32
    %c0_i32_0 = arith.constant 0 : i32
    %c0_i32_1 = arith.constant 0 : i32
    return %c0_i32, %c0_i32_0 : i32, i32
  }
  func.func @transform_6(%arg0: i32) -> (i32, i32) {
    %c0_i32 = arith.constant 0 : i32
    %c0_i32_0 = arith.constant 0 : i32
    %c0_i32_1 = arith.constant 0 : i32
    return %c0_i32, %c0_i32_0 : i32, i32
  }
  func.func @transform_7(%arg0: i32) -> (i32, i32) {
    %c0_i32 = arith.constant 0 : i32
    %c0_i32_0 = arith.constant 0 : i32
    %c0_i32_1 = arith.constant 0 : i32
    return %c0_i32, %c0_i32_0 : i32, i32
  }
  func.func @transform_8(%arg0: i32) -> (i32, i32) {
    %c0_i32 = arith.constant 0 : i32
    %c0_i32_0 = arith.constant 0 : i32
    %c0_i32_1 = arith.constant 0 : i32
    return %c0_i32, %c0_i32_0 : i32, i32
  }
  func.func @transform_9(%arg0: i32) -> (i32, i32) {
    %c0_i32 = arith.constant 0 : i32
    %c0_i32_0 = arith.constant 0 : i32
    %c0_i32_1 = arith.constant 0 : i32
    return %c0_i32, %c0_i32_0 : i32, i32
  }
  func.func @transform_10(%arg0: i32) -> (i32, i32) {
    %c0_i32 = arith.constant 0 : i32
    %c0_i32_0 = arith.constant 0 : i32
    %c0_i32_1 = arith.constant 0 : i32
    return %c0_i32, %c0_i32_0 : i32, i32
  }
  func.func @transform_11(%arg0: i32) -> (i32, i32) {
    %c0_i32 = arith.constant 0 : i32
    %c0_i32_0 = arith.constant 0 : i32
    %c0_i32_1 = arith.constant 0 : i32
    return %c0_i32, %c0_i32_0 : i32, i32
  }
}

</mosaic_0001>

<bundles_post_ra>
// kernel: prodlda_forward.1
= control target key start
LH: loop header
LB: loop body
LE: loop exit
PB: predicated region body
PF: predicated region fallthrough
CT: control target
= control target key end

     0   :  { %16 = vsyncpa [#allocation4], 0  ;;  %s4751_s17 = smov 0   ;;  %s5528_s0 = inlined_call_operand.vmem [shape: f32[2,128,32], index: 0, kind: input, shape index: {}]   ;;  %s5529_s1 = inlined_call_operand.vmem [shape: f32[2,128,128], index: 1, kind: input, shape index: {}]   ;;  %s5530_s2 = inlined_call_operand.vmem [shape: f32[2,4,32,32], index: 2, kind: input, shape index: {}]   ;;  %s5531_s3 = inlined_call_operand.vmem [shape: f32[32,128], index: 3, kind: input, shape index: {}]   ;;  %s5532_s4 = inlined_call_operand.vmem [shape: f32[128,128], index: 4, kind: input, shape index: {}]   ;;  %s5533_s5 = inlined_call_operand.vmem [shape: f32[32,64], index: 5, kind: input, shape index: {}]   ;;  %s5534_s6 = inlined_call_operand.vmem [shape: f32[64,64], index: 6, kind: input, shape index: {}]   ;;  %s5535_s7 = inlined_call_operand.vmem [shape: f32[64,32], index: 7, kind: input, shape index: {}]   ;;  %s5536_s8 = inlined_call_operand.vmem [shape: f32[16,32], index: 8, kind: input, shape index: {}]   ;;  %s5537_s9 = inlined_call_operand.vmem [shape: f32[8,128], index: 9, kind: input, shape index: {}]   ;;  %s5538_s10 = inlined_call_operand.vmem [shape: f32[8,16], index: 10, kind: input, shape index: {}]   ;;  %s5539_s11 = inlined_call_operand.hbm [shape: f32[8,32], index: 11, kind: output, shape index: {}]  }
   0x1 LB: > { %s4757_s18 = sadd.s32 4294967295, %s4681_s17   ;;  %p3654_p0 = scmp.ge.s32.totalorder %s4681_s17, 1  ;;  %s4681_s17 = sphi %s4751_s17, %s22_s17  }
   0x2   : > { %p353_p1 = scmp.lt.s32.totalorder %s4681_s17, 3 }
   0x4   : > { %p354_p2 = pnand %p3654_p0, %p353_p1 }
   0x5   : > { %v4764_v0 = vld [vmem:[%s5537_s9 + $0x3] ss:$0 sm:$0xff] (!%p354_p2)  ;;  %v4769_v1 = vld [vmem:[%s5537_s9 + $0x4] ss:$0 sm:$0xff] (!%p354_p2)  ;;  %p398_p3 = scmp.lt.s32.totalorder (!%p354_p2), %s4757_s18, 1  ;;  %v453_v3 = vld [vmem:[%s5531_s3 + $0x8] sm:$0xff] (!%p354_p2) }
   0x6   : > { %357 = sbr.rel (%p354_p2) target bundleno = 3330 (0xd02), region = 64  ;;  %v452_v2 = vld [vmem:[%s5531_s3] sm:$0xff] (!%p354_p2)  ;;  %v454_v4 = vld [vmem:[%s5531_s3 + $0x10] sm:$0xff] (!%p354_p2)  ;;  %v455_v5 = vld [vmem:[%s5531_s3 + $0x18] sm:$0xff] (!%p354_p2)  ;;  %vm466_vm0 = vcmask (!%p354_p2), 261120   ;;  %vm1086_vm1 = vcmask (!%p354_p2), 130112  }
   0x7   : > { %v464_v6 = vpack.c.bf16 (!%p354_p2), %v453_v3, %v452_v2  ;;  %v465_v7 = vpack.c.bf16 (!%p354_p2), %v455_v5, %v454_v4  ;;  %v721_v35 = vld [vmem:[%s5532_s4] sm:$0xff] (!%p354_p2)  ;;  %v722_v36 = vld [vmem:[%s5532_s4 + $0x8] sm:$0xff] (!%p354_p2)  ;;  %v723_v37 = vld [vmem:[%s5532_s4 + $0x10] sm:$0xff] (!%p354_p2)  ;;  %vm1093_vm2 = vcmask (!%p354_p2), 195712   ;;  %vm1100_vm3 = vcmask (!%p354_p2), 261312   ;;  %p3673_p4 = scmp.ne.s32.totalorder (!%p354_p2), %s4757_s18, 1 }
   0x8   : > { %v745_v38 = vpack.c.bf16 (!%p354_p2), %v722_v36, %v721_v35  ;;  %v724_v39 = vld [vmem:[%s5532_s4 + $0x18] sm:$0xff] (!%p354_p2)  ;;  %v725_v41 = vld [vmem:[%s5532_s4 + $0x20] sm:$0xff] (!%p354_p2)  ;;  %v726_v42 = vld [vmem:[%s5532_s4 + $0x28] sm:$0xff] (!%p354_p2)  ;;  %vm1159_vm4 = vcmask (!%p354_p2), 1041409   ;;  %vm1160_vm5 = vcmask (!%p354_p2), 1042434   ;;  %vm1162_vm6 = vcmask (!%p354_p2), 1043459  }
   0x9   : > { %3897 = vmatprep.subr.bf16.mxu0 (!%p354_p2), %v464_v6  ;;  %v746_v40 = vpack.c.bf16 (!%p354_p2), %v724_v39, %v723_v37  ;;  %v747_v43 = vpack.c.bf16 (!%p354_p2), %v726_v42, %v725_v41  ;;  %v727_v44 = vld [vmem:[%s5532_s4 + $0x30] sm:$0xff] (!%p354_p2)  ;;  %v728_v45 = vld [vmem:[%s5532_s4 + $0x38] sm:$0xff] (!%p354_p2)  ;;  %v729_v47 = vld [vmem:[%s5532_s4 + $0x40] sm:$0xff] (!%p354_p2)  ;;  %vm1392_vm7 = vcmask (!%p354_p2), 257024  }
   0xa   : > { %3898 = vmatpush3.bf16.msra.mxu0 (!%p354_p2), %v464_v6  ;;  %v748_v46 = vpack.c.bf16 (!%p354_p2), %v728_v45, %v727_v44  ;;  %v730_v48 = vld [vmem:[%s5532_s4 + $0x48] sm:$0xff] (!%p354_p2)  ;;  %v731_v50 = vld [vmem:[%s5532_s4 + $0x50] sm:$0xff] (!%p354_p2)  ;;  %v732_v51 = vld [vmem:[%s5532_s4 + $0x58] sm:$0xff] (!%p354_p2) }
   0xb   : > { %3899 = vmatprep.subr.bf16.mxu0 (!%p354_p2), %v465_v7  ;;  %v749_v49 = vpack.c.bf16 (!%p354_p2), %v730_v48, %v729_v47  ;;  %v750_v52 = vpack.c.bf16 (!%p354_p2), %v732_v51, %v731_v50  ;;  %v733_v37 = vld [vmem:[%s5532_s4 + $0x60] sm:$0xff] (!%p354_p2)  ;;  %v736_v41 = vld [vmem:[%s5532_s4 + $0x78] sm:$0xff] (!%p354_p2) }
   0xd   : > { %s399_s12 = scalar_select %p398_p3, %s4757_s18, 1 }
   0xe   : > { %3900 = vmatpush3.bf16.msra.mxu0 %v465_v7  ;;  %vm4684_vm8 = vmmov (!%p3673_p4), 0   ;;  %s4686_s27 = smov (!%p3673_p4), 64   ;;  %vm1908_vm9 = vcmask (!%p3673_p4), 523264   ;;  %s4687_s30 = smov (!%p3673_p4), 96   ;;  %vm3030_vm10 = vcmask (!%p3673_p4), 261248   ;;  %vm3002_vm11 = vcmask (!%p3673_p4), 130048  }
   0xf   : > { %s4785_s13 = sshll.u32 %s399_s12, 7  ;;  %3949 = vmatprep.subr.bf16.mxu0 %v745_v38  ;;  %s4688_s12 = smov (!%p3673_p4), 16  }
  0x10   : > { %s4791_s16 = scalar_lea.vmem %s5528_s0, %s4785_s13  ;;  %s4821_s21 = scalar_lea.vmem %s5529_s1, %s4785_s13 }
  0x11   : > { %v420_v8 = vld [vmem:[%s4791_s16] sm:$0xff]  ;;  %v421_v9 = vld [vmem:[%s4791_s16 + $0x8] sm:$0xff]  ;;  %v422_v10 = vld [vmem:[%s4791_s16 + $0x10] sm:$0xff]  ;;  %s5087_s15 = scalar_lea.vmem %s5530_s2, %s4785_s13  ;;  %s4689_s14 = smov (!%p3673_p4), 112  }
  0x12   : > { %v456_v11 = vpack.c.bf16 %v421_v9, %v420_v8  ;;  %v423_v12 = vld [vmem:[%s4791_s16 + $0x18] sm:$0xff]  ;;  %v424_v13 = vld [vmem:[%s4791_s16 + $0x20] sm:$0xff]  ;;  %v425_v14 = vld [vmem:[%s4791_s16 + $0x28] sm:$0xff] }
  0x13   : > { %v457_v15 = vpack.c.bf16 %v423_v12, %v422_v10  ;;  %v458_v16 = vpack.c.bf16 %v425_v14, %v424_v13  ;;  %v426_v17 = vld [vmem:[%s4791_s16 + $0x30] sm:$0xff]  ;;  %v427_v18 = vld [vmem:[%s4791_s16 + $0x38] sm:$0xff]  ;;  %v428_v19 = vld [vmem:[%s4791_s16 + $0x40] sm:$0xff] }
  0x14   : > { %3901 = vmatprep.mubr.msk.bf16.mxu0 %vm466_vm0, %v456_v11  ;;  %v429_v20 = vld [vmem:[%s4791_s16 + $0x48] sm:$0xff]  ;;  %v459_v21 = vpack.c.bf16 %v427_v18, %v426_v17  ;;  %v430_v23 = vld [vmem:[%s4791_s16 + $0x50] sm:$0xff]  ;;  %v431_v24 = vld [vmem:[%s4791_s16 + $0x58] sm:$0xff] }
  0x15   : > { %3902 = vmatmul.mubr.msk.bf16.vlgmr.msra.gmra.mrb[0].mxu0 %vm466_vm0, %v457_v15  ;;  %v460_v22 = vpack.c.bf16 %v429_v20, %v428_v19  ;;  %v432_v25 = vld [vmem:[%s4791_s16 + $0x60] sm:$0xff]  ;;  %v433_v26 = vld [vmem:[%s4791_s16 + $0x68] sm:$0xff]  ;;  %v461_v27 = vpack.c.bf16 %v431_v24, %v430_v23  ;;  %v434_v29 = vld [vmem:[%s4791_s16 + $0x70] sm:$0xff] }
  0x16   : > { %3905 = vmatprep.mubr.msk.bf16.mxu0 %vm466_vm0, %v458_v16  ;;  %v462_v28 = vpack.c.bf16 %v433_v26, %v432_v25  ;;  %v435_v30 = vld [vmem:[%s4791_s16 + $0x78] sm:$0xff]  ;;  %v436_v32 = vld [vmem:[%s4821_s21] sm:$0xff]  ;;  %v437_v33 = vld [vmem:[%s4821_s21 + $0x8] sm:$0xff]  ;;  %3950 = vmatpush3.bf16.msra.mxu0 %v745_v38  ;;  %s3672_s16 = sshll.u32 %s4757_s18, 2 }
  0x17   : > { %v463_v31 = vpack.c.bf16 %v435_v30, %v434_v29  ;;  %v4825_v34 = vpack.c.bf16 %v437_v33, %v436_v32  ;;  %3951 = vmatprep.subr.bf16.mxu0 %v746_v40  ;;  %v438_v15 = vld [vmem:[%s4821_s21 + $0x10] sm:$0xff]  ;;  %v439_v16 = vld [vmem:[%s4821_s21 + $0x18] sm:$0xff]  ;;  %v440_v17 = vld [vmem:[%s4821_s21 + $0x20] sm:$0xff]  ;;  %s1391_s19 = scalar_lea.vmem [#allocation2], %s3672_s16 }
  0x18   : > { %v441_v18 = vld [vmem:[%s4821_s21 + $0x28] sm:$0xff]  ;;  %v4868_v19 = vpack.c.bf16 %v439_v16, %v438_v15  ;;  %v444_v23 = vld [vmem:[%s4821_s21 + $0x40] sm:$0xff]  ;;  %v450_v33 = vld [vmem:[%s4821_s21 + $0x70] sm:$0xff] }
  0x19   : > { %3933 = vmatprep.mubr.bf16.mxu1 %v4825_v34  ;;  %v590_v20 = vpack.c.bf16 %v441_v18, %v440_v17  ;;  %v445_v24 = vld [vmem:[%s4821_s21 + $0x48] sm:$0xff]  ;;  %v448_v29 = vld [vmem:[%s4821_s21 + $0x60] sm:$0xff]  ;;  %v451_v35 = vld [vmem:[%s4821_s21 + $0x78] sm:$0xff] }
  0x1a   : > { %3952 = vmatpush3.bf16.msra.mxu0 %v746_v40  ;;  %v4877_v26 = vpack.c.bf16 %v445_v24, %v444_v23  ;;  %v449_v30 = vld [vmem:[%s4821_s21 + $0x68] sm:$0xff]  ;;  %v4893_v36 = vpack.c.bf16 %v451_v35, %v450_v33  ;;  %v735_v40 = vld [vmem:[%s5532_s4 + $0x70] sm:$0xff] }
  0x1b   : > { %3953 = vmatprep.subr.bf16.mxu0 %v747_v43  ;;  %v4887_v32 = vpack.c.bf16 %v449_v30, %v448_v29  ;;  %v734_v38 = vld [vmem:[%s5532_s4 + $0x68] sm:$0xff]  ;;  %v752_v42 = vpack.c.bf16 %v736_v41, %v735_v40 }
  0x1c   : > { %v751_v39 = vpack.c.bf16 %v734_v38, %v733_v37 }
  0x1d   : > { %3906 = vmatmul.mubr.msk.bf16.gmra.mrb[4].mxu0 %vm466_vm0, %v459_v21  ;;  %v442_v21 = vld [vmem:[%s4821_s21 + $0x30] sm:$0xff] }
  0x1e   : > { %3909 = vmatprep.mubr.msk.bf16.mxu0 %vm466_vm0, %v460_v22  ;;  %3954 = vmatpush3.bf16.msra.mxu0 %v747_v43  ;;  %v443_v22 = vld [vmem:[%s4821_s21 + $0x38] sm:$0xff]  ;;  %v3669_v43 = vld [vmem:[%s5537_s9] ss:$0 sm:$0xff] }
  0x1f   : > { %3955 = vmatprep.subr.bf16.mxu0 %v748_v46  ;;  %v4875_v25 = vpack.c.bf16 %v443_v22, %v442_v21 }
  0x22   : > { %3956 = vmatpush3.bf16.msra.mxu0 %v748_v46 }
  0x23   : > { %3957 = vmatprep.subr.bf16.mxu0 %v749_v49 }
  0x25   : > { %3910 = vmatmul.mubr.msk.bf16.gmra.mrb[8].mxu0 %vm466_vm0, %v461_v27  ;;  %v446_v27 = vld [vmem:[%s4821_s21 + $0x50] sm:$0xff] }
  0x26   : > { %3913 = vmatprep.mubr.msk.bf16.mxu0 %vm466_vm0, %v462_v28  ;;  %3958 = vmatpush3.bf16.msra.mxu0 %v749_v49  ;;  %v447_v28 = vld [vmem:[%s4821_s21 + $0x58] sm:$0xff] }
  0x27   : > { %3959 = vmatprep.subr.bf16.mxu0 %v750_v52 }
  0x2a   : > { %3960 = vmatpush3.bf16.msra.mxu0 %v750_v52 }
  0x2b   : > { %3961 = vmatprep.subr.bf16.mxu0 %v751_v39 }
  0x2d   : > { %3914 = vmatmul.mubr.msk.bf16.gmra.mrb[12].mxu0 %vm466_vm0, %v463_v31  ;;  %v4885_v31 = vpack.c.bf16 %v447_v28, %v446_v27 }
  0x2e   : > { %3962 = vmatpush3.bf16.msra.mxu0 %v751_v39 }
  0x2f   : > { %3963 = vmatprep.subr.bf16.mxu0 %v752_v42 }
  0x32   : > { %3964 = vmatpush3.bf16.msra.mxu0 %v752_v42 }
  0xe8   : > { %v3903_v53 = vpop.f32.mrb[0].mxu0 }
  0xe9   : > { %v525_v54 = vpop.f32.mrb[1].mxu0 }
  0xea   : > { %v3904_v55 = vpop.f32.mrb[2].mxu0 }
  0xeb   : > { %v597_v56 = vpack.c.bf16 %v3904_v55, %v3903_v53  ;;  %v528_v57 = vpop.f32.mrb[3].mxu0 }
  0xec   : > { %v596_v58 = vpack.c.bf16 %v528_v57, %v525_v54 }
  0xee   : > { %3917 = vmatprep.subr.bf16.mxu1 %v596_v58 }
  0xef   : > { %3918 = vmatpush3.bf16.msra.mxu1 %v596_v58 }
  0xf0   : > { %v3907_v59 = vpop.f32.mrb[4].mxu0  ;;  %3919 = vmatprep.subr.bf16.mxu1 %v597_v56 }
  0xf1   : > { %v541_v60 = vpop.f32.mrb[5].mxu0 }
  0xf2   : > { %v3908_v61 = vpop.f32.mrb[6].mxu0 }
  0xf3   : > { %v599_v62 = vpack.c.bf16 %v3908_v61, %v3907_v59  ;;  %v544_v63 = vpop.f32.mrb[7].mxu0  ;;  %3920 = vmatpush3.bf16.msra.mxu1 %v597_v56 }
  0xf4   : > { %v598_v2 = vpack.c.bf16 %v544_v63, %v541_v60 }
  0xf6   : > { %3921 = vmatprep.subr.bf16.mxu1 %v598_v2 }
  0xf7   : > { %3922 = vmatpush3.bf16.msra.mxu1 %v598_v2 }
  0xf8   : > { %v3911_v3 = vpop.f32.mrb[8].mxu0  ;;  %3923 = vmatprep.subr.bf16.mxu1 %v599_v62 }
  0xf9   : > { %v557_v4 = vpop.f32.mrb[9].mxu0 }
  0xfa   : > { %v3912_v5 = vpop.f32.mrb[10].mxu0 }
  0xfb   : > { %v601_v6 = vpack.c.bf16 %v3912_v5, %v3911_v3  ;;  %v560_v7 = vpop.f32.mrb[11].mxu0  ;;  %3924 = vmatpush3.bf16.msra.mxu1 %v599_v62 }
  0xfc   : > { %v600_v8 = vpack.c.bf16 %v560_v7, %v557_v4 }
  0xfe   : > { %3925 = vmatprep.subr.bf16.mxu1 %v600_v8 }
  0xff   : > { %3926 = vmatpush3.bf16.msra.mxu1 %v600_v8 }
 0x100   : > { %v3915_v9 = vpop.f32.mrb[12].mxu0  ;;  %3927 = vmatprep.subr.bf16.mxu1 %v601_v6 }
 0x101   : > { %v573_v10 = vpop.f32.mrb[13].mxu0 }
 0x102   : > { %v3916_v11 = vpop.f32.mrb[14].mxu0 }
 0x103   : > { %v603_v12 = vpack.c.bf16 %v3916_v11, %v3915_v9  ;;  %v576_v13 = vpop.f32.mrb[15].mxu0  ;;  %3928 = vmatpush3.bf16.msra.mxu1 %v601_v6 }
 0x104   : > { %v602_v14 = vpack.c.bf16 %v576_v13, %v573_v10 }
 0x106   : > { %3929 = vmatprep.subr.bf16.mxu1 %v602_v14 }
 0x107   : > { %3930 = vmatpush3.bf16.msra.mxu1 %v602_v14 }
 0x108   : > { %3931 = vmatprep.subr.bf16.mxu1 %v603_v12 }
 0x10b   : > { %3932 = vmatpush3.bf16.msra.mxu1 %v603_v12 }
 0x10e   : > { %3934 = vmatmul.mubr.bf16.vlgmr.msra.gmra.mrb[0].mxu1 %v4868_v19 }
 0x10f   : > { %3937 = vmatprep.mubr.bf16.mxu1 %v590_v20 }
 0x116   : > { %3938 = vmatmul.mubr.bf16.gmra.mrb[4].mxu1 %v4875_v25 }
 0x117   : > { %3941 = vmatprep.mubr.bf16.mxu1 %v4877_v26 }
 0x11e   : > { %3942 = vmatmul.mubr.bf16.gmra.mrb[8].mxu1 %v4885_v31 }
 0x11f   : > { %3945 = vmatprep.mubr.bf16.mxu1 %v4887_v32 }
 0x126   : > { %3946 = vmatmul.mubr.bf16.gmra.mrb[12].mxu1 %v4893_v36 }
 0x127   : > { %4001 = vmatprep.mubr.bf16.mxu1 %v590_v20 }
 0x1e1   : > { %v3935_v44 = vpop.f32.mrb[0].mxu1 }
 0x1e2   : > { %v642_v45 = vpop.f32.mrb[1].mxu1  ;;  %v4913_v48 = vadd.f32 %v3935_v44, %v3669_v43 }
 0x1e3   : > { %v4911_v46 = vadd.f32 %v3669_v43, %v642_v45  ;;  %v3936_v47 = vpop.f32.mrb[2].mxu1 }
 0x1e4   : > { %v4915_v49 = vadd.f32 %v3936_v47, %v3669_v43  ;;  %v645_v50 = vpop.f32.mrb[3].mxu1  ;;  %v707_v55 = vmax.f32 %v4913_v48, 0.0 }
 0x1e5   : > { %v4917_v51 = vadd.f32 %v3669_v43, %v645_v50  ;;  %v705_v53 = vmax.f32 %v4911_v46, 0.0 }
 0x1e6   : > { %v708_v52 = vmax.f32 %v4915_v49, 0.0 }
 0x1e7   : > { %v706_v54 = vmax.f32 %v4917_v51, 0.0 }
 0x1e8   : > { %v738_v58 = vpack.c.bf16 %v708_v52, %v707_v55 }
 0x1e9   : > { %v737_v56 = vpack.c.bf16 %v706_v54, %v705_v53  ;;  %v3939_v57 = vpop.f32.mrb[4].mxu1 }
 0x1ea   : > { %v658_v59 = vpop.f32.mrb[5].mxu1  ;;  %v4933_v62 = vadd.f32 %v3939_v57, %v3669_v43 }
 0x1eb   : > { %v4931_v60 = vadd.f32 %v3669_v43, %v658_v59  ;;  %v3940_v61 = vpop.f32.mrb[6].mxu1  ;;  %3965 = vmatprep.mubr.bf16.mxu0 %v737_v56 }
 0x1ec   : > { %v4935_v63 = vadd.f32 %v3940_v61, %v3669_v43  ;;  %v661_v2 = vpop.f32.mrb[7].mxu1  ;;  %3966 = vmatmul.mubr.bf16.vlgmr.msra.gmra.mrb[16].mxu0 %v738_v58  ;;  %v711_v7 = vmax.f32 %v4933_v62, 0.0 }
 0x1ed   : > { %v4937_v3 = vadd.f32 %v3669_v43, %v661_v2  ;;  %v709_v5 = vmax.f32 %v4931_v60, 0.0 }
 0x1ee   : > { %v712_v4 = vmax.f32 %v4935_v63, 0.0 }
 0x1ef   : > { %v710_v6 = vmax.f32 %v4937_v3, 0.0 }
 0x1f0   : > { %v740_v10 = vpack.c.bf16 %v712_v4, %v711_v7 }
 0x1f1   : > { %v739_v8 = vpack.c.bf16 %v710_v6, %v709_v5  ;;  %v3943_v9 = vpop.f32.mrb[8].mxu1 }
 0x1f2   : > { %v674_v11 = vpop.f32.mrb[9].mxu1  ;;  %v4953_v14 = vadd.f32 %v3943_v9, %v3669_v43 }
 0x1f3   : > { %v4951_v12 = vadd.f32 %v3669_v43, %v674_v11  ;;  %v3944_v13 = vpop.f32.mrb[10].mxu1  ;;  %3969 = vmatprep.mubr.bf16.mxu0 %v739_v8 }
 0x1f4   : > { %v4955_v15 = vadd.f32 %v3944_v13, %v3669_v43  ;;  %v677_v16 = vpop.f32.mrb[11].mxu1  ;;  %3970 = vmatmul.mubr.bf16.gmra.mrb[20].mxu0 %v740_v10  ;;  %v715_v22 = vmax.f32 %v4953_v14, 0.0 }
 0x1f5   : > { %v4957_v17 = vadd.f32 %v3669_v43, %v677_v16  ;;  %v713_v20 = vmax.f32 %v4951_v12, 0.0 }
 0x1f6   : > { %v716_v18 = vmax.f32 %v4955_v15, 0.0 }
 0x1f7   : > { %v714_v21 = vmax.f32 %v4957_v17, 0.0 }
 0x1f8   : > { %v742_v27 = vpack.c.bf16 %v716_v18, %v715_v22 }
 0x1f9   : > { %v741_v23 = vpack.c.bf16 %v714_v21, %v713_v20  ;;  %v3947_v24 = vpop.f32.mrb[12].mxu1 }
 0x1fa   : > { %v690_v28 = vpop.f32.mrb[13].mxu1  ;;  %v4973_v33 = vadd.f32 %v3947_v24, %v3669_v43 }
 0x1fb   : > { %v4971_v29 = vadd.f32 %v3669_v43, %v690_v28  ;;  %v3948_v30 = vpop.f32.mrb[14].mxu1  ;;  %3973 = vmatprep.mubr.bf16.mxu0 %v741_v23 }
 0x1fc   : > { %v4975_v35 = vadd.f32 %v3948_v30, %v3669_v43  ;;  %v693_v37 = vpop.f32.mrb[15].mxu1  ;;  %3974 = vmatmul.mubr.bf16.gmra.mrb[24].mxu0 %v742_v27  ;;  %v719_v42 = vmax.f32 %v4973_v33, 0.0  ;;  %v419_v33 = vld [vmem:[%s5537_s9 + $0x5] sm:$0x1] }
 0x1fd   : > { %v4977_v38 = vadd.f32 %v3669_v43, %v693_v37  ;;  %v717_v40 = vmax.f32 %v4971_v29, 0.0  ;;  %4605 = vpush %v419_v33 }
 0x1fe   : > { %v720_v39 = vmax.f32 %v4975_v35, 0.0 }
 0x1ff   : > { %v718_v41 = vmax.f32 %v4977_v38, 0.0  ;;  %v1075_v38 = vlaneseq }
 0x200   : > { %v744_v45 = vpack.c.bf16 %v720_v39, %v719_v42 }
 0x201   : > { %v743_v44 = vpack.c.bf16 %v718_v41, %v717_v40 }
 0x203   : > { %3977 = vmatprep.mubr.bf16.mxu0 %v743_v44 }
 0x204   : > { %3978 = vmatmul.mubr.bf16.gmra.mrb[28].mxu0 %v744_v45 }
 0x205   : > { %3997 = vmatprep.mubr.bf16.mxu0 %v4825_v34 }
 0x22e   : > { %s4606_s13 = spop %4605 }
 0x2bf   : > { %v3967_v43 = vpop.f32.mrb[16].mxu0 }
 0x2c0   : > { %v787_v47 = vpop.f32.mrb[17].mxu0 }
 0x2c1   : > { %v3968_v50 = vpop.f32.mrb[18].mxu0 }
 0x2c2   : > { %v851_v56 = vpack.c.bf16 %v3968_v50, %v3967_v43  ;;  %v790_v57 = vpop.f32.mrb[19].mxu0  ;;  %v5001_v43 = vld [vmem:[%s5537_s9 + $0x1] ss:$0 sm:$0xff] }
 0x2c3   : > { %v850_v58 = vpack.c.bf16 %v790_v57, %v787_v47 }
 0x2c5   : > { %3981 = vmatprep.subr.bf16.mxu0 %v850_v58  ;;  %4547 = vmatprep.subr.bf16.mxu1 %v850_v58 }
 0x2c6   : > { %3982 = vmatpush3.bf16.msra.mxu0 %v850_v58  ;;  %4555 = vmatpush3.bf16.msra.mxu1 %v850_v58 }
 0x2c7   : > { %v3971_v59 = vpop.f32.mrb[20].mxu0  ;;  %3983 = vmatprep.subr.bf16.mxu0 %v851_v56  ;;  %4548 = vmatprep.subr.bf16.mxu1 %v851_v56 }
 0x2c8   : > { %v803_v61 = vpop.f32.mrb[21].mxu0 }
 0x2c9   : > { %v3972_v2 = vpop.f32.mrb[22].mxu0 }
 0x2ca   : > { %v853_v8 = vpack.c.bf16 %v3972_v2, %v3971_v59  ;;  %v806_v9 = vpop.f32.mrb[23].mxu0  ;;  %3984 = vmatpush3.bf16.msra.mxu0 %v851_v56  ;;  %4556 = vmatpush3.bf16.msra.mxu1 %v851_v56 }
 0x2cb   : > { %v852_v34 = vpack.c.bf16 %v806_v9, %v803_v61 }
 0x2cd   : > { %3985 = vmatprep.subr.bf16.mxu0 %v852_v34  ;;  %4549 = vmatprep.subr.bf16.mxu1 %v852_v34 }
 0x2ce   : > { %3986 = vmatpush3.bf16.msra.mxu0 %v852_v34  ;;  %4557 = vmatpush3.bf16.msra.mxu1 %v852_v34 }
 0x2cf   : > { %v3975_v10 = vpop.f32.mrb[24].mxu0  ;;  %3987 = vmatprep.subr.bf16.mxu0 %v853_v8  ;;  %4550 = vmatprep.subr.bf16.mxu1 %v853_v8 }
 0x2d0   : > { %v819_v11 = vpop.f32.mrb[25].mxu0 }
 0x2d1   : > { %v3976_v13 = vpop.f32.mrb[26].mxu0 }
 0x2d2   : > { %v855_v16 = vpack.c.bf16 %v3976_v13, %v3975_v10  ;;  %v822_v23 = vpop.f32.mrb[27].mxu0  ;;  %3988 = vmatpush3.bf16.msra.mxu0 %v853_v8  ;;  %4558 = vmatpush3.bf16.msra.mxu1 %v853_v8 }
 0x2d3   : > { %v854_v24 = vpack.c.bf16 %v822_v23, %v819_v11  ;;  %v5012_v11 = vld [vmem:[%s5537_s9 + $0x2] ss:$0 sm:$0xff] }
 0x2d5   : > { %3989 = vmatprep.subr.bf16.mxu0 %v854_v24  ;;  %4551 = vmatprep.subr.bf16.mxu1 %v854_v24 }
 0x2d6   : > { %3990 = vmatpush3.bf16.msra.mxu0 %v854_v24  ;;  %4559 = vmatpush3.bf16.msra.mxu1 %v854_v24 }
 0x2d7   : > { %v3979_v27 = vpop.f32.mrb[28].mxu0  ;;  %3991 = vmatprep.subr.bf16.mxu0 %v855_v16  ;;  %4552 = vmatprep.subr.bf16.mxu1 %v855_v16 }
 0x2d8   : > { %v835_v28 = vpop.f32.mrb[29].mxu0 }
 0x2d9   : > { %v3980_v30 = vpop.f32.mrb[30].mxu0 }
 0x2da   : > { %v857_v37 = vpack.c.bf16 %v3980_v30, %v3979_v27  ;;  %v838_v44 = vpop.f32.mrb[31].mxu0  ;;  %3992 = vmatpush3.bf16.msra.mxu0 %v855_v16  ;;  %4560 = vmatpush3.bf16.msra.mxu1 %v855_v16 }
 0x2db   : > { %v856_v45 = vpack.c.bf16 %v838_v44, %v835_v28 }
 0x2dd   : > { %3993 = vmatprep.subr.bf16.mxu0 %v856_v45  ;;  %4553 = vmatprep.subr.bf16.mxu1 %v856_v45 }
 0x2de   : > { %3994 = vmatpush3.bf16.msra.mxu0 %v856_v45  ;;  %4561 = vmatpush3.bf16.msra.mxu1 %v856_v45 }
 0x2df   : > { %3995 = vmatprep.subr.bf16.mxu0 %v857_v37  ;;  %4554 = vmatprep.subr.bf16.mxu1 %v857_v37 }
 0x2e2   : > { %3996 = vmatpush3.bf16.msra.mxu0 %v857_v37  ;;  %4562 = vmatpush3.bf16.msra.mxu1 %v857_v37 }
 0x2e5   : > { %3998 = vmatmul.mubr.bf16.vlgmr.msra.gmra.mrb[32].mxu0 %v4868_v19  ;;  %4002 = vmatmul.mubr.bf16.vlgmr.msra.gmra.mrb[16].mxu1 %v4875_v25 }
 0x2e6   : > { %4005 = vmatprep.mubr.bf16.mxu1 %v4877_v26 }
 0x2ed   : > { %4006 = vmatmul.mubr.bf16.gmra.mrb[20].mxu1 %v4885_v31 }
 0x2ee   : > { %4009 = vmatprep.mubr.bf16.mxu1 %v4887_v32 }
 0x2f5   : > { %4010 = vmatmul.mubr.bf16.gmra.mrb[24].mxu1 %v4893_v36 }
 0x3b8   : > { %v3999_v47 = vpop.f32.mrb[32].mxu0  ;;  %v4003_v50 = vpop.f32.mrb[16].mxu1 }
 0x3b9   : > { %v905_v56 = vadd.f32 %v3999_v47, %v5001_v43  ;;  %v921_v19 = vadd.f32 %v4003_v50, %v5001_v43  ;;  %v896_v25 = vpop.f32.mrb[33].mxu0  ;;  %v912_v57 = vpop.f32.mrb[17].mxu1 }
 0x3ba   : > { %v897_v26 = vadd.f32 %v5001_v43, %v896_v25  ;;  %v913_v31 = vadd.f32 %v5001_v43, %v912_v57  ;;  %v4000_v32 = vpop.f32.mrb[34].mxu0  ;;  %v4004_v58 = vpop.f32.mrb[18].mxu1 }
 0x3bb   : > { %v961_v36 = vmax.f32 %v905_v56, 0.0  ;;  %v965_v59 = vmax.f32 %v921_v19, 0.0  ;;  %v908_v61 = vadd.f32 %v4000_v32, %v5001_v43  ;;  %v924_v2 = vadd.f32 %v4004_v58, %v5001_v43  ;;  %v899_v8 = vpop.f32.mrb[35].mxu0  ;;  %v915_v9 = vpop.f32.mrb[19].mxu1 }
 0x3bc   : > { %v959_v34 = vmax.f32 %v897_v26, 0.0  ;;  %v963_v10 = vmax.f32 %v913_v31, 0.0  ;;  %v900_v27 = vadd.f32 %v5001_v43, %v899_v8  ;;  %v916_v28 = vadd.f32 %v5001_v43, %v915_v9 }
 0x3bd   : > { %v981_v13 = vadd.f32 %v965_v59, %v711_v7  ;;  %v977_v16 = vadd.f32 %v961_v36, %v707_v55  ;;  %v962_v23 = vmax.f32 %v908_v61, 0.0  ;;  %v966_v24 = vmax.f32 %v924_v2, 0.0 }
 0x3be   : > { %v975_v30 = vadd.f32 %v959_v34, %v705_v53  ;;  %v979_v37 = vadd.f32 %v963_v10, %v709_v5  ;;  %v960_v45 = vmax.f32 %v900_v27, 0.0  ;;  %v964_v47 = vmax.f32 %v916_v28, 0.0 }
 0x3bf   : > { %v1001_v44 = vmul.f32 %v5012_v11, %v981_v13  ;;  %v997_v62 = vmul.f32 %v5012_v11, %v977_v16  ;;  %v978_v55 = vadd.f32 %v962_v23, %v708_v52  ;;  %v982_v53 = vadd.f32 %v966_v24, %v712_v4 }
 0x3c0   : > { %v4007_v7 = vpop.f32.mrb[20].mxu1  ;;  %v999_v56 = vmul.f32 %v5012_v11, %v979_v37  ;;  %v995_v19 = vmul.f32 %v5012_v11, %v975_v30  ;;  %v976_v49 = vadd.f32 %v960_v45, %v706_v54  ;;  %v980_v63 = vadd.f32 %v964_v47, %v710_v6 }
 0x3c1   : > { %1023 = vadd.xlane.f32.xlu1 %v1001_v44  ;;  %v928_v48 = vpop.f32.mrb[21].mxu1  ;;  %1015 = vadd.xlane.f32.xlu0 %v997_v62  ;;  %v937_v50 = vadd.f32 %v4007_v7, %v5001_v43  ;;  %v1002_v26 = vmul.f32 %v5012_v11, %v982_v53  ;;  %v998_v31 = vmul.f32 %v5012_v11, %v978_v55  ;;  %v1078_v62 = vshrl.u32 %v1075_v38, 7 }
 0x3c2   : > { %v4008_v46 = vpop.f32.mrb[22].mxu1  ;;  %v929_v25 = vadd.f32 %v5001_v43, %v928_v48  ;;  %v1000_v2 = vmul.f32 %v5012_v11, %v980_v63  ;;  %v996_v8 = vmul.f32 %v5012_v11, %v976_v49 }
 0x3c3   : > { %v940_v60 = vadd.f32 %v4008_v46, %v5001_v43  ;;  %v931_v5 = vpop.f32.mrb[23].mxu1  ;;  %v969_v52 = vmax.f32 %v937_v50, 0.0 }
 0x3c4   : > { %v932_v57 = vadd.f32 %v5001_v43, %v931_v5  ;;  %v967_v54 = vmax.f32 %v929_v25, 0.0 }
 0x3c5   : > { %1019 = vadd.xlane.f32.xlu1 %v999_v56  ;;  %1011 = vadd.xlane.f32.xlu0 %v995_v19  ;;  %v970_v4 = vmax.f32 %v940_v60, 0.0  ;;  %v985_v51 = vadd.f32 %v969_v52, %v715_v22 }
 0x3c6   : > { %v968_v36 = vmax.f32 %v932_v57, 0.0  ;;  %v983_v14 = vadd.f32 %v967_v54, %v713_v20 }
 0x3c7   : > { %v986_v61 = vadd.f32 %v970_v4, %v716_v18  ;;  %v1005_v18 = vmul.f32 %v5012_v11, %v985_v51 }
 0x3c8   : > { %v4011_v32 = vpop.f32.mrb[24].mxu1  ;;  %v984_v22 = vadd.f32 %v968_v36, %v714_v21  ;;  %v1003_v12 = vmul.f32 %v5012_v11, %v983_v14 }
 0x3c9   : > { %v944_v58 = vpop.f32.mrb[25].mxu1  ;;  %1025 = vadd.xlane.f32.xlu1 %v1002_v26  ;;  %1017 = vadd.xlane.f32.xlu0 %v998_v31  ;;  %v953_v15 = vadd.f32 %v4011_v32, %v5001_v43  ;;  %v1006_v16 = vmul.f32 %v5012_v11, %v986_v61  ;;  %v1044_v31 = vld [vmem:[%s5087_s15 + $0x8] sm:$0xff]  ;;  %v1043_v32 = vld [vmem:[%s5087_s15] sm:$0xff] }
 0x3ca   : > { %v4012_v59 = vpop.f32.mrb[26].mxu1  ;;  %v945_v3 = vadd.f32 %v5001_v43, %v944_v58  ;;  %v1004_v23 = vmul.f32 %v5012_v11, %v984_v22  ;;  %v1048_v61 = vld [vmem:[%s5087_s15 + $0x28] sm:$0xff] }
 0x3cb   : > { %v947_v6 = vpop.f32.mrb[27].mxu1  ;;  %v956_v10 = vadd.f32 %v4012_v59, %v5001_v43  ;;  %v973_v20 = vmax.f32 %v953_v15, 0.0 }
 0x3cc   : > { %v948_v9 = vadd.f32 %v5001_v43, %v947_v6  ;;  %v971_v34 = vmax.f32 %v945_v3, 0.0  ;;  %v1047_v6 = vld [vmem:[%s5087_s15 + $0x20] sm:$0xff] }
 0x3cd   : > { %1021 = vadd.xlane.f32.xlu1 %v1000_v2  ;;  %1013 = vadd.xlane.f32.xlu0 %v996_v8  ;;  %v974_v21 = vmax.f32 %v956_v10, 0.0  ;;  %v989_v43 = vadd.f32 %v973_v20, %v719_v42 }
 0x3ce   : > { %v972_v13 = vmax.f32 %v948_v9, 0.0  ;;  %v987_v17 = vadd.f32 %v971_v34, %v717_v40 }
 0x3cf   : > { %v990_v27 = vadd.f32 %v974_v21, %v720_v39  ;;  %v1009_v40 = vmul.f32 %v5012_v11, %v989_v43 }
 0x3d0   : > { %v988_v24 = vadd.f32 %v972_v13, %v718_v41  ;;  %v1007_v28 = vmul.f32 %v5012_v11, %v987_v17  ;;  %v1076_v41 = vand.u32 127, %v1075_v38 }
 0x3d1   : > { %1033 = vadd.xlane.f32.xlu1 %v1006_v16  ;;  %1031 = vadd.xlane.f32.xlu0 %v1005_v18  ;;  %v1010_v29 = vmul.f32 %v5012_v11, %v990_v27  ;;  %v1049_v16 = vld [vmem:[%s5087_s15 + $0x30] sm:$0xff] }
 0x3d2   : > { %v1008_v30 = vmul.f32 %v5012_v11, %v988_v24  ;;  %v1081_v44 = vadd.s32 4294967288, %v1076_v41  ;;  %v1088_v7 = vadd.s32 4294967280, %v1076_v41  ;;  %v1095_v48 = vadd.s32 4294967272, %v1076_v41 }
 0x3d3   : > { %v5075_v45 = vsub.s32 %v1076_v41, %v1078_v62 }
 0x3d4   : > { %v5077_v47 = vsub.s32 %v1081_v44, %v1078_v62  ;;  %v5079_v50 = vsub.s32 %v1088_v7, %v1078_v62  ;;  %v5081_v46 = vsub.s32 %v1095_v48, %v1078_v62  ;;  %v1052_v62 = vld [vmem:[%s5087_s15 + $0x48] sm:$0xff]  ;;  %v1051_v48 = vld [vmem:[%s5087_s15 + $0x40] sm:$0xff] }
 0x3d5   : > { %1029 = vadd.xlane.f32.xlu1 %v1004_v23  ;;  %1027 = vadd.xlane.f32.xlu0 %v1003_v12  ;;  %v1045_v23 = vld [vmem:[%s5087_s15 + $0x10] sm:$0xff] }
 0x3d9   : > { %1035 = vadd.xlane.f32.xlu1 %v1007_v28  ;;  %1037 = vadd.xlane.f32.xlu0 %v1008_v30  ;;  %v1050_v30 = vld [vmem:[%s5087_s15 + $0x38] sm:$0xff] }
 0x3dd   : > { %1041 = vadd.xlane.f32.xlu1 %v1010_v29  ;;  %1039 = vadd.xlane.f32.xlu0 %v1009_v40  ;;  %v1046_v29 = vld [vmem:[%s5087_s15 + $0x18] sm:$0xff] }
 0x44e   : > { %v1024_v35 = vpop.xlane.xlu1 %1023  ;;  %v1016_v39 = vpop.xlane.xlu0 %1015 }
 0x44f   : > { %v1114_v52 = vrot.slane %v1024_v35, %v5079_v50  ;;  %v1092_v25 = vrot.slane %v1016_v39, %v5079_v50 }
 0x452   : > { %v1020_v42 = vpop.xlane.xlu1 %1019  ;;  %v1012_v37 = vpop.xlane.xlu0 %1011 }
 0x453   : > { %v1105_v5 = vrot.slane %v1020_v42, %v5075_v45  ;;  %v1080_v56 = vrot.slane %v1012_v37, %v5075_v45 }
 0x456   : > { %v1026_v55 = vpop.xlane.xlu1 %1025  ;;  %v1018_v11 = vpop.xlane.xlu0 %1017 }
 0x457   : > { %v1119_v57 = vrot.slane %v1026_v55, %v5081_v46  ;;  %v1099_v63 = vrot.slane %v1018_v11, %v5081_v46 }
 0x45a   : > { %v1022_v53 = vpop.xlane.xlu1 %1021  ;;  %v1014_v60 = vpop.xlane.xlu0 %1013 }
 0x45b   : > { %v1109_v19 = vrot.slane %v1022_v53, %v5077_v47  ;;  %v1085_v49 = vrot.slane %v1014_v60, %v5077_v47 }
 0x45d   : > { %v1110_v4 = vsel %vm1086_vm1, %v1109_v19, %v1105_v5  ;;  %v1087_v26 = vsel %vm1086_vm1, %v1085_v49, %v1080_v56 }
 0x45e   : > { %v1115_v58 = vsel %vm1093_vm2, %v1114_v52, %v1110_v4  ;;  %v1094_v51 = vsel %vm1093_vm2, %v1092_v25, %v1087_v26  ;;  %v1034_v54 = vpop.xlane.xlu1 %1033  ;;  %v1032_v36 = vpop.xlane.xlu0 %1031  ;;  %v1054_v52 = vld [vmem:[%s5087_s15 + $0x58] sm:$0xff]  ;;  %v1053_v25 = vld [vmem:[%s5087_s15 + $0x50] sm:$0xff] }
 0x45f   : > { %v1101_v59 = vsel %vm1100_vm3, %v1099_v63, %v1094_v51  ;;  %v1120_v3 = vsel %vm1100_vm3, %v1119_v57, %v1115_v58  ;;  %v1133_v12 = vrot.slane %v1032_v36, %v5079_v50  ;;  %v1138_v33 = vrot.slane %v1034_v54, %v5081_v46  ;;  %v1055_v51 = vld [vmem:[%s5087_s15 + $0x60] sm:$0xff] }
 0x460   : > { %v1195_v2 = vmul.f32 %v1101_v59, %v1044_v31  ;;  %v1194_v8 = vmul.f32 %v1101_v59, %v1043_v32  ;;  %v1199_v18 = vmul.f32 %v1120_v3, %v1048_v61  ;;  %v1198_v34 = vmul.f32 %v1120_v3, %v1047_v6  ;;  %v1056_v32 = vld [vmem:[%s5087_s15 + $0x68] sm:$0xff]  ;;  %v1058_v6 = vld [vmem:[%s5087_s15 + $0x78] sm:$0xff] }
 0x461   : > { %v1200_v27 = vmul.f32 %v1120_v3, %v1049_v16  ;;  %v1196_v28 = vmul.f32 %v1101_v59, %v1045_v23  ;;  %v1201_v41 = vmul.f32 %v1120_v3, %v1050_v30  ;;  %v1197_v42 = vmul.f32 %v1101_v59, %v1046_v29  ;;  %v1057_v3 = vld [vmem:[%s5087_s15 + $0x70] sm:$0xff] }
 0x462   : > { %v1030_v9 = vpop.xlane.xlu1 %1029  ;;  %v1028_v14 = vpop.xlane.xlu0 %1027  ;;  %v1213_v22 = vsel %vm466_vm0, %v1195_v2, 0.0  ;;  %v1210_v15 = vsel %vm466_vm0, %v1194_v8, 0.0  ;;  %v1225_v24 = vsel %vm466_vm0, %v1199_v18, 0.0  ;;  %v1222_v43 = vsel %vm466_vm0, %v1198_v34, 0.0 }
 0x463   : > { %v1128_v10 = vrot.slane %v1030_v9, %v5077_v47  ;;  %v1124_v13 = vrot.slane %v1028_v14, %v5075_v45  ;;  %1214 = vadd.xlane.f32.xlu1 %v1213_v22  ;;  %1211 = vadd.xlane.f32.xlu0 %v1210_v15  ;;  %v1228_v35 = vsel %vm466_vm0, %v1200_v27, 0.0  ;;  %v1216_v39 = vsel %vm466_vm0, %v1196_v28, 0.0 }
 0x464   : > { %v1231_v53 = vsel %vm466_vm0, %v1201_v41, 0.0  ;;  %v1219_v60 = vsel %vm466_vm0, %v1197_v42, 0.0 }
 0x465   : > { %v1129_v20 = vsel %vm1086_vm1, %v1128_v10, %v1124_v13 }
 0x466   : > { %v1036_v17 = vpop.xlane.xlu1 %1035  ;;  %v1038_v21 = vpop.xlane.xlu0 %1037  ;;  %v1134_v40 = vsel %vm1093_vm2, %v1133_v12, %v1129_v20  ;;  %v1260_v12 = vstv %s4606_s13 }
 0x467   : > { %1226 = vadd.xlane.f32.xlu1 %v1225_v24  ;;  %1223 = vadd.xlane.f32.xlu0 %v1222_v43  ;;  %v1143_v37 = vrot.slane %v1036_v17, %v5075_v45  ;;  %v1147_v44 = vrot.slane %v1038_v21, %v5077_v47  ;;  %v1139_v7 = vsel %vm1100_vm3, %v1138_v33, %v1134_v40 }
 0x468   : > { %v1203_v5 = vmul.f32 %v1139_v7, %v1052_v62  ;;  %v1202_v56 = vmul.f32 %v1139_v7, %v1051_v48  ;;  %v1205_v26 = vmul.f32 %v1139_v7, %v1054_v52  ;;  %v1204_v31 = vmul.f32 %v1139_v7, %v1053_v25 }
 0x469   : > { %v1148_v19 = vsel %vm1086_vm1, %v1147_v44, %v1143_v37 }
 0x46a   : > { %v1040_v38 = vpop.xlane.xlu0 %1039  ;;  %v1042_v55 = vpop.xlane.xlu1 %1041  ;;  %v1237_v63 = vsel %vm466_vm0, %v1203_v5, 0.0  ;;  %v1234_v4 = vsel %vm466_vm0, %v1202_v56, 0.0  ;;  %v1243_v54 = vsel %vm466_vm0, %v1205_v26, 0.0  ;;  %v1240_v36 = vsel %vm466_vm0, %v1204_v31, 0.0 }
 0x46b   : > { %1229 = vadd.xlane.f32.xlu1 %v1228_v35  ;;  %1217 = vadd.xlane.f32.xlu0 %v1216_v39  ;;  %v1152_v11 = vrot.slane %v1040_v38, %v5079_v50  ;;  %v1157_v49 = vrot.slane %v1042_v55, %v5081_v46 }
 0x46d   : > { %v1153_v57 = vsel %vm1093_vm2, %v1152_v11, %v1148_v19 }
 0x46e   : > { %v1158_v58 = vsel %vm1100_vm3, %v1157_v49, %v1153_v57 }
 0x46f   : > { %1232 = vadd.xlane.f32.xlu1 %v1231_v53  ;;  %1220 = vadd.xlane.f32.xlu0 %v1219_v60  ;;  %v1207_v59 = vmul.f32 %v1158_v58, %v1056_v32  ;;  %v1206_v61 = vmul.f32 %v1158_v58, %v1055_v51  ;;  %v1208_v9 = vmul.f32 %v1158_v58, %v1057_v3 }
 0x470   : > { %v1209_v14 = vmul.f32 %v1158_v58, %v1058_v6 }
 0x471   : > { %v1249_v2 = vsel %vm466_vm0, %v1207_v59, 0.0  ;;  %v1246_v8 = vsel %vm466_vm0, %v1206_v61, 0.0  ;;  %v1252_v22 = vsel %vm466_vm0, %v1208_v9, 0.0 }
 0x472   : > { %v1255_v15 = vsel %vm466_vm0, %v1209_v14, 0.0 }
 0x473   : > { %1238 = vadd.xlane.f32.xlu1 %v1237_v63  ;;  %1235 = vadd.xlane.f32.xlu0 %v1234_v4 }
 0x477   : > { %1244 = vadd.xlane.f32.xlu1 %v1243_v54  ;;  %1241 = vadd.xlane.f32.xlu0 %v1240_v36 }
 0x47b   : > { %1250 = vadd.xlane.f32.xlu0 %v1249_v2  ;;  %1247 = vadd.xlane.f32.xlu1 %v1246_v8 }
 0x47f   : > { %1253 = vadd.xlane.f32.xlu0 %v1252_v22  ;;  %1256 = vadd.xlane.f32.xlu1 %v1255_v15 }
 0x495   : > { %1905 = vrot.lane.b32.xlu0 (!%p3673_p4), %v4764_v0, %s4686_s27 }
 0x499   : > { %3026 = vrot.lane.b32.xlu0 (!%p3673_p4), %v4769_v1, %s4687_s30 }
 0x4f0   : > { %v1215_v18 = vpop.xlane.xlu1 %1214  ;;  %v1212_v34 = vpop.xlane.xlu0 %1211 }
 0x4f1   : > { %v1263_v21 = vadd.f32 %v1260_v12, %v1215_v18  ;;  %v1262_v24 = vadd.f32 %v1260_v12, %v1212_v34 }
 0x4f3   : > { %v1279_v33 = vmax.f32 %v1263_v21, 0.0  ;;  %v1278_v38 = vmax.f32 %v1262_v24, 0.0 }
 0x4f4   : > { %v1227_v10 = vpop.xlane.xlu1 %1226  ;;  %v1224_v13 = vpop.xlane.xlu0 %1223 }
 0x4f5   : > { %v1267_v43 = vadd.f32 %v1260_v12, %v1227_v10  ;;  %v1266_v30 = vadd.f32 %v1260_v12, %v1224_v13  ;;  %v1318_v60 = vrot.slane %v1279_v33, %v5077_v47  ;;  %v1314_v56 = vrot.slane %v1278_v38, %v5075_v45 }
 0x4f7   : > { %v1283_v35 = vmax.f32 %v1267_v43, 0.0  ;;  %v1282_v48 = vmax.f32 %v1266_v30, 0.0  ;;  %v1319_v9 = vsel %vm1086_vm1, %v1318_v60, %v1314_v56 }
 0x4f8   : > { %v1230_v16 = vpop.xlane.xlu1 %1229  ;;  %v1218_v23 = vpop.xlane.xlu0 %1217 }
 0x4f9   : > { %v1268_v39 = vadd.f32 %v1260_v12, %v1230_v16  ;;  %v1264_v41 = vadd.f32 %v1260_v12, %v1218_v23  ;;  %v1337_v19 = vrot.slane %v1283_v35, %v5077_v47  ;;  %v1333_v32 = vrot.slane %v1282_v48, %v5075_v45 }
 0x4fb   : > { %v1284_v49 = vmax.f32 %v1268_v39, 0.0  ;;  %v1280_v52 = vmax.f32 %v1264_v41, 0.0  ;;  %v1338_v18 = vsel %vm1086_vm1, %v1337_v19, %v1333_v32  ;;  %v1401_v39 = vld [vmem:[%s5533_s5 + $0x10] sm:$0xff] (!%p3673_p4)  ;;  %v4683_v41 = vmov (!%p3673_p4), 0.0|0.0  }
 0x4fc   : > { %v1233_v20 = vpop.xlane.xlu1 %1232  ;;  %v1221_v17 = vpop.xlane.xlu0 %1220  ;;  %4355 = vmatprep.subr.bf16.mxu0 (!%p3673_p4), %v4683_v41  ;;  %4349 = vmatprep.subr.bf16.mxu1 (!%p3673_p4), %v4683_v41 }
 0x4fd   : > { %v1269_v44 = vadd.f32 %v1260_v12, %v1233_v20  ;;  %v1265_v62 = vadd.f32 %v1260_v12, %v1221_v17  ;;  %v1342_v3 = vrot.slane %v1284_v49, %v5079_v50  ;;  %v1323_v6 = vrot.slane %v1280_v52, %v5079_v50 }
 0x4ff   : > { %v1285_v63 = vmax.f32 %v1269_v44, 0.0  ;;  %v1281_v4 = vmax.f32 %v1265_v62, 0.0  ;;  %v1343_v21 = vsel %vm1093_vm2, %v1342_v3, %v1338_v18  ;;  %v1324_v24 = vsel %vm1093_vm2, %v1323_v6, %v1319_v9  ;;  %v1402_v44 = vld [vmem:[%s5533_s5 + $0x18] sm:$0xff] (!%p3673_p4) }
 0x500   : > { %v1239_v27 = vpop.xlane.xlu1 %1238  ;;  %v1236_v28 = vpop.xlane.xlu0 %1235  ;;  %v1417_v62 = vand.u32 (!%p3673_p4), 4294901760, %v1401_v39 }
 0x501   : > { %v1271_v29 = vadd.f32 %v1260_v12, %v1239_v27  ;;  %v1270_v40 = vadd.f32 %v1260_v12, %v1236_v28  ;;  %v1347_v14 = vrot.slane %v1285_v63, %v5081_v46  ;;  %v1328_v22 = vrot.slane %v1281_v4, %v5081_v46 }
 0x503   : > { %v1287_v55 = vmax.f32 %v1271_v29, 0.0  ;;  %v1286_v11 = vmax.f32 %v1270_v40, 0.0  ;;  %v1348_v27 = vsel %vm1100_vm3, %v1347_v14, %v1343_v21  ;;  %v1329_v28 = vsel %vm1100_vm3, %v1328_v22, %v1324_v24 }
 0x504   : > { %v1245_v42 = vpop.xlane.xlu1 %1244  ;;  %v1242_v37 = vpop.xlane.xlu0 %1241  ;;  %v1387_v29 = vsel %vm1159_vm4, %v1348_v27, %v1329_v28  ;;  %v1900_v27 = vld [vmem:[%s5534_s6 + $0x20] sm:$0xff] (!%p3673_p4)  ;;  %v1901_v28 = vld [vmem:[%s5534_s6 + $0x28] sm:$0xff] (!%p3673_p4) }
 0x505   : > { %v1272_v7 = vadd.f32 %v1260_v12, %v1242_v37  ;;  %v1273_v53 = vadd.f32 %v1260_v12, %v1245_v42  ;;  %v1356_v58 = vrot.slane %v1287_v55, %v5077_v47  ;;  %v1352_v51 = vrot.slane %v1286_v11, %v5075_v45 }
 0x506   : > { %v1420_v55 = vand.u32 (!%p3673_p4), 4294901760, %v1402_v44 }
 0x507   : > { %v1288_v5 = vmax.f32 %v1272_v7, 0.0  ;;  %v1289_v54 = vmax.f32 %v1273_v53, 0.0  ;;  %v1357_v34 = vsel %vm1086_vm1, %v1356_v58, %v1352_v51  ;;  %v4685_v7 = vmov (!%p3673_p4), 0.0  }
 0x508   : > { %v1248_v25 = vpop.xlane.xlu1 %1247  ;;  %v1251_v57 = vpop.xlane.xlu0 %1250  ;;  %4032 = vmatprep.mubr.msk.f32.mxu0 (!%p3673_p4), %vm4684_vm8, %v4685_v7  ;;  %4021 = vmatprep.mubr.msk.f32.mxu1 (!%p3673_p4), %vm4684_vm8, %v4685_v7  ;;  %v1512_v56 = vsub.f32 (!%p3673_p4), %v1402_v44, %v1420_v55  ;;  %v4353_v51 = vpack.c.bf16 (!%p3673_p4), %v1420_v55, %v1417_v62 }
 0x509   : > { %v1274_v26 = vadd.f32 %v1260_v12, %v1248_v25  ;;  %v1275_v31 = vadd.f32 %v1260_v12, %v1251_v57  ;;  %v1361_v36 = vrot.slane %v1288_v5, %v5079_v50  ;;  %v1366_v10 = vrot.slane %v1289_v54, %v5081_v46 }
 0x50a   : > { %v1505_v5 = vsub.f32 (!%p3673_p4), %v1401_v39, %v1417_v62  ;;  %v1513_v63 = vand.u32 (!%p3673_p4), 4294901760, %v1512_v56 }
 0x50b   : > { %v1290_v59 = vmax.f32 %v1274_v26, 0.0  ;;  %v1291_v61 = vmax.f32 %v1275_v31, 0.0  ;;  %v1362_v16 = vsel %vm1093_vm2, %v1361_v36, %v1357_v34  ;;  %v1896_v34 = vld [vmem:[%s5534_s6] sm:$0xff] (!%p3673_p4) }
 0x50c   : > { %v1257_v2 = vpop.xlane.xlu1 %1256  ;;  %v1254_v8 = vpop.xlane.xlu0 %1253  ;;  %v1506_v57 = vand.u32 (!%p3673_p4), 4294901760, %v1505_v5  ;;  %v1514_v58 = vsub.f32 (!%p3673_p4), %v1512_v56, %v1513_v63  ;;  %v4365_v22 = vpack.c.bf16 (!%p3673_p4), %v1512_v56, %v1505_v5 }
 0x50d   : > { %v1277_v15 = vadd.f32 %v1260_v12, %v1257_v2  ;;  %v1276_v13 = vadd.f32 %v1260_v12, %v1254_v8  ;;  %v1371_v23 = vrot.slane %v1290_v59, %v5075_v45  ;;  %v1375_v20 = vrot.slane %v1291_v61, %v5077_v47 }
 0x50e   : > { %v1367_v12 = vsel %vm1100_vm3, %v1366_v10, %v1362_v16  ;;  %v1507_v32 = vsub.f32 (!%p3673_p4), %v1505_v5, %v1506_v57  ;;  %v1515_v3 = vand.u32 (!%p3673_p4), 4294901760, %v1514_v58  ;;  %v4377_v18 = vpack.c.bf16 (!%p3673_p4), %v1513_v63, %v1506_v57  ;;  %v1897_v10 = vld [vmem:[%s5534_s6 + $0x8] sm:$0xff] (!%p3673_p4) }
 0x50f   : > { %v1293_v17 = vmax.f32 %v1277_v15, 0.0  ;;  %v1292_v43 = vmax.f32 %v1276_v13, 0.0  ;;  %v1376_v47 = vsel %vm1086_vm1, %v1375_v20, %v1371_v23  ;;  %v1388_v33 = vsel %vm1160_vm5, %v1367_v12, %v1387_v29  ;;  %v1898_v20 = vld [vmem:[%s5534_s6 + $0x10] sm:$0xff] (!%p3673_p4) }
 0x510   : > { %1397 = sbr.rel (%p3673_p4) target bundleno = 3305 (0xce9), region = 68  ;;  %v1508_v61 = vand.u32 (!%p3673_p4), 4294901760, %v1507_v32  ;;  %v1913_v13 = vand.u32 (!%p3673_p4), 4294901760, %v1896_v34  ;;  %v1916_v16 = vand.u32 (!%p3673_p4), 4294901760, %v1897_v10  ;;  %v1919_v21 = vand.u32 (!%p3673_p4), 4294901760, %v1898_v20 }
 0x511   : > { %v1385_v30 = vrot.slane %v1293_v17, %v5081_v46  ;;  %v1380_v45 = vrot.slane %v1292_v43, %v5079_v50  ;;  %v1399_v50 = vld [vmem:[%s5533_s5] sm:$0xff] (!%p3673_p4)  ;;  %v1400_v46 = vld [vmem:[%s5533_s5 + $0x8] sm:$0xff] (!%p3673_p4)  ;;  %v1899_v17 = vld [vmem:[%s5534_s6 + $0x18] sm:$0xff] (!%p3673_p4)  ;;  %v1928_v12 = vand.u32 (!%p3673_p4), 4294901760, %v1901_v28 }
 0x512   : > { %v1411_v42 = vand.u32 (!%p3673_p4), 4294901760, %v1399_v50  ;;  %v1414_v37 = vand.u32 (!%p3673_p4), 4294901760, %v1400_v46  ;;  %v4359_v9 = vpack.c.bf16 (!%p3673_p4), %v1515_v3, %v1508_v61  ;;  %v5228_v23 = vpack.c.bf16 (!%p3673_p4), %v1916_v16, %v1913_v13 }
 0x513   : > { %v1381_v40 = vsel %vm1093_vm2, %v1380_v45, %v1376_v47  ;;  %v1922_v24 = vand.u32 (!%p3673_p4), 4294901760, %v1899_v17  ;;  %v5248_v45 = vsub.f32 (!%p3673_p4), %v1896_v34, %v1913_v13  ;;  %v5250_v47 = vsub.f32 (!%p3673_p4), %v1897_v10, %v1916_v16 }
 0x514   : > { %v1386_v38 = vsel %vm1100_vm3, %v1385_v30, %v1381_v40  ;;  %v1491_v53 = vsub.f32 (!%p3673_p4), %v1399_v50, %v1411_v42  ;;  %v1498_v60 = vsub.f32 (!%p3673_p4), %v1400_v46, %v1414_v37  ;;  %v4350_v49 = vpack.c.bf16 (!%p3673_p4), %v1414_v37, %v1411_v42  ;;  %v1902_v40 = vld [vmem:[%s5534_s6 + $0x30] sm:$0xff] (!%p3673_p4) }
 0x515   : > { %v1389_v35 = vsel %vm1162_vm6, %v1386_v38, %v1388_v33  ;;  %v5238_v43 = vpack.c.bf16 (!%p3673_p4), %v1922_v24, %v1919_v21  ;;  %v1925_v30 = vand.u32 (!%p3673_p4), 4294901760, %v1900_v27  ;;  %v1903_v33 = vld [vmem:[%s5534_s6 + $0x38] sm:$0xff] (!%p3673_p4)  ;;  %v1931_v38 = vand.u32 (!%p3673_p4), 4294901760, %v1902_v40 }
 0x516   : > { %1393 = vst.msk [vmem:[%s1391_s19] sm:$0xf] %vm1392_vm7, %v1389_v35  ;;  %v1492_v52 = vand.u32 (!%p3673_p4), 4294901760, %v1491_v53  ;;  %v1499_v25 = vand.u32 (!%p3673_p4), 4294901760, %v1498_v60  ;;  %4351 = vmatpush3.bf16.msra.mxu1 (!%p3673_p4), %v4350_v49  ;;  %v4362_v14 = vpack.c.bf16 (!%p3673_p4), %v1498_v60, %v1491_v53  ;;  %v1934_v35 = vand.u32 (!%p3673_p4), 4294901760, %v1903_v33 }
 0x517   : > { %4352 = vmatprep.subr.bf16.mxu1 %v4683_v41  ;;  %v5252_v29 = vpack.c.bf16 %v1928_v12, %v1925_v30  ;;  %v1998_v50 = vand.u32 4294901760, %v5248_v45  ;;  %v2005_v46 = vand.u32 4294901760, %v5250_v47  ;;  %v5264_v39 = vsub.f32 %v1898_v20, %v1919_v21 }
 0x518   : > { %v1493_v26 = vsub.f32 %v1491_v53, %v1492_v52  ;;  %v1500_v31 = vsub.f32 %v1498_v60, %v1499_v25  ;;  %v4374_v15 = vpack.c.bf16 %v1499_v25, %v1492_v52  ;;  %v5266_v42 = vsub.f32 %v1899_v17, %v1922_v24 }
 0x519   : > { %v5268_v37 = vsub.f32 %v1900_v27, %v1925_v30  ;;  %v5270_v44 = vsub.f32 %v1901_v28, %v1928_v12  ;;  %v5272_v62 = vpack.c.bf16 %v1934_v35, %v1931_v38  ;;  %v5276_v55 = vsub.f32 %v1903_v33, %v1934_v35 }
 0x51a   : > { %v1494_v36 = vand.u32 4294901760, %v1493_v26  ;;  %v1501_v59 = vand.u32 4294901760, %v1500_v31  ;;  %4354 = vmatpush3.bf16.msra.mxu1 %v4353_v51  ;;  %v2006_v53 = vsub.f32 %v5250_v47, %v2005_v46  ;;  %v2012_v5 = vand.u32 4294901760, %v5264_v39 }
 0x51b   : > { %4385 = vmatprep.subr.bf16.mxu1 %v4683_v41  ;;  %v2019_v56 = vand.u32 4294901760, %v5266_v42  ;;  %v2033_v26 = vand.u32 4294901760, %v5270_v44  ;;  %v4434_v34 = vpack.c.bf16 %v2005_v46, %v1998_v50  ;;  %v2453_v46 = vld [vmem:[%s5535_s7 + $0x18] sm:$0xff] }
 0x51c   : > { %v4356_v2 = vpack.c.bf16 %v1501_v59, %v1494_v36  ;;  %v2047_v59 = vand.u32 4294901760, %v5276_v55 }
 0x51d   : > { %v1398_v48 = vld [vmem:[#allocation2] sm:$0xff]  ;;  %v2020_v52 = vsub.f32 %v5266_v42, %v2019_v56  ;;  %v2034_v58 = vsub.f32 %v5270_v44, %v2033_v26  ;;  %v4437_v10 = vpack.c.bf16 %v2019_v56, %v2012_v5  ;;  %v2457_v56 = vld [vmem:[%s5535_s7 + $0x38] sm:$0xff] }
 0x51e   : > { %v1408_v11 = vsel %vm466_vm0, %v1398_v48, 0  ;;  %4357 = vmatpush3.bf16.msra.mxu0 %v4356_v2  ;;  %v5274_v48 = vsub.f32 %v1902_v40, %v1931_v38 }
 0x51f   : > { %v1479_v19 = vand.u32 4294901760, %v1408_v11  ;;  %4358 = vmatprep.subr.bf16.mxu0 %v4683_v41  ;;  %v2021_v63 = vand.u32 4294901760, %v2020_v52 }
 0x520   : > { %v2040_v36 = vand.u32 4294901760, %v5274_v48 }
 0x521   : > { %v1480_v4 = vsub.f32 %v1408_v11, %v1479_v19  ;;  %v1999_v11 = vsub.f32 %v5248_v45, %v1998_v50  ;;  %v2452_v50 = vld [vmem:[%s5535_s7 + $0x10] sm:$0xff] }
 0x522   : > { %4360 = vmatpush3.bf16.msra.mxu0 %v4359_v9  ;;  %v2041_v3 = vsub.f32 %v5274_v48, %v2040_v36  ;;  %v4443_v16 = vpack.c.bf16 %v2047_v59, %v2040_v36 }
 0x523   : > { %v1481_v54 = vand.u32 4294901760, %v1480_v4  ;;  %4361 = vmatprep.subr.bf16.mxu0 %v4683_v41  ;;  %v2000_v60 = vand.u32 4294901760, %v1999_v11 }
 0x524   : > { %v2042_v2 = vand.u32 4294901760, %v2041_v3 }
 0x525   : > { %v1482_v6 = vsub.f32 %v1480_v4, %v1481_v54  ;;  %4033 = vmatmul.mubr.f32.vlgmr.msra.gmra.mrb[0].mxu0 %v1479_v19 }
 0x526   : > { %4363 = vmatpush3.bf16.msra.mxu0 %v4362_v14  ;;  %4043 = vmatprep.mubr.msk.f32.mxu0 %vm4684_vm8, %v4685_v7  ;;  %v4410_v14 = vpack.c.bf16 %v5250_v47, %v5248_v45 }
 0x527   : > { %v1483_v8 = vand.u32 4294901760, %v1482_v6  ;;  %4364 = vmatprep.subr.bf16.mxu0 %v4683_v41  ;;  %v2048_v6 = vsub.f32 %v5276_v55, %v2047_v59 }
 0x529   : > { %4022 = vmatmul.mubr.f32.vlgmr.msra.gmra.mrb[0].mxu1 %v1483_v8  ;;  %v2049_v8 = vand.u32 4294901760, %v2048_v6 }
 0x52a   : > { %4095 = vmatprep.mubr.msk.f32.mxu1 %vm4684_vm8, %v4685_v7  ;;  %4366 = vmatpush3.bf16.msra.mxu0 %v4365_v22  ;;  %v4413_v22 = vpack.c.bf16 %v5266_v42, %v5264_v39  ;;  %v2475_v42 = vand.u32 4294901760, %v2453_v46 }
 0x52b   : > { %4367 = vmatprep.subr.bf16.mxu0 %v4683_v41  ;;  %4387 = vmatpush3.bf16.msra.mxu1 %v5228_v23  ;;  %v4407_v9 = vpack.c.bf16 %v2049_v8, %v2042_v2 }
 0x52c   : > { %4388 = vmatprep.subr.bf16.mxu1 %v4683_v41 }
 0x52d   : > { %4044 = vmatmul.mubr.f32.vlgmr.msra.gmra.mrb[0].mxu0 %v1480_v4  ;;  %v2026_v4 = vand.u32 4294901760, %v5268_v37 }
 0x52e   : > { %4369 = vmatpush3.bf16.msra.mxu0 %v4350_v49  ;;  %4054 = vmatprep.mubr.msk.f32.mxu0 %vm4684_vm8, %v4685_v7 }
 0x52f   : > { %4370 = vmatprep.subr.bf16.mxu0 %v4683_v41  ;;  %4390 = vmatpush3.bf16.msra.mxu1 %v5238_v43  ;;  %v2027_v32 = vsub.f32 %v5268_v37, %v2026_v4  ;;  %v4440_v13 = vpack.c.bf16 %v2033_v26, %v2026_v4 }
 0x530   : > { %4391 = vmatprep.subr.bf16.mxu1 %v4683_v41 }
 0x532   : > { %4372 = vmatpush3.bf16.msra.mxu0 %v4353_v51 }
 0x533   : > { %4373 = vmatprep.subr.bf16.mxu0 %v4683_v41  ;;  %4393 = vmatpush3.bf16.msra.mxu1 %v5252_v29 }
 0x534   : > { %4394 = vmatprep.subr.bf16.mxu1 %v4683_v41 }
 0x535   : > { %4055 = vmatmul.mubr.f32.vlgmr.msra.gmra.mrb[0].mxu0 %v1481_v54  ;;  %v2035_v54 = vand.u32 4294901760, %v2034_v58 }
 0x536   : > { %4375 = vmatpush3.bf16.msra.mxu0 %v4374_v15  ;;  %4065 = vmatprep.mubr.msk.f32.mxu0 %vm4684_vm8, %v4685_v7  ;;  %v4416_v15 = vpack.c.bf16 %v5270_v44, %v5268_v37  ;;  %v2454_v44 = vld [vmem:[%s5535_s7 + $0x20] sm:$0xff] }
 0x537   : > { %4376 = vmatprep.subr.bf16.mxu0 %v4683_v41  ;;  %4396 = vmatpush3.bf16.msra.mxu1 %v5272_v62 }
 0x538   : > { %4397 = vmatprep.subr.bf16.mxu1 %v4683_v41 }
 0x53a   : > { %4378 = vmatpush3.bf16.msra.mxu0 %v4377_v18  ;;  %v4419_v18 = vpack.c.bf16 %v5276_v55, %v5274_v48  ;;  %v2478_v48 = vand.u32 4294901760, %v2454_v44 }
 0x53b   : > { %4379 = vmatprep.subr.bf16.mxu0 %v4683_v41 }
 0x53c   : > { %v5392_v4 = vsub.f32 %v2454_v44, %v2478_v48 }
 0x53d   : > { %4066 = vmatmul.mubr.f32.vlgmr.msra.gmra.mrb[0].mxu0 %v1479_v19 }
 0x53e   : > { %4381 = vmatpush3.bf16.msra.mxu0 %v4350_v49  ;;  %4076 = vmatprep.mubr.msk.f32.mxu0 %vm4684_vm8, %v4685_v7  ;;  %v2013_v49 = vsub.f32 %v5264_v39, %v2012_v5  ;;  %v2472_v39 = vand.u32 4294901760, %v2452_v50  ;;  %v2456_v5 = vld [vmem:[%s5535_s7 + $0x30] sm:$0xff] }
 0x53f   : > { %4382 = vmatprep.subr.bf16.mxu0 %v4683_v41 }
 0x540   : > { %v2014_v57 = vand.u32 4294901760, %v2013_v49  ;;  %v5362_v37 = vpack.c.bf16 %v2475_v42, %v2472_v39  ;;  %v2487_v49 = vand.u32 4294901760, %v2457_v56 }
 0x542   : > { %4384 = vmatpush3.bf16.msra.mxu0 %v4353_v51  ;;  %v4401_v31 = vpack.c.bf16 %v2021_v63, %v2014_v57  ;;  %v2028_v51 = vand.u32 4294901760, %v2027_v32  ;;  %v5388_v57 = vsub.f32 %v2452_v50, %v2472_v39  ;;  %v5390_v63 = vsub.f32 %v2453_v46, %v2475_v42  ;;  %v1906_v50 = vpop.permute.xlu0 %1905 }
 0x543   : > { %4457 = vmatprep.subr.bf16.mxu0 %v4683_v41  ;;  %v5400_v58 = vsub.f32 %v2457_v56, %v2487_v49 }
 0x544   : > { %v4404_v61 = vpack.c.bf16 %v2035_v54, %v2028_v51  ;;  %v2565_v59 = vand.u32 4294901760, %v5388_v57 }
 0x545   : > { %4077 = vmatmul.mubr.f32.vlgmr.msra.gmra.mrb[0].mxu0 %v1479_v19  ;;  %v2007_v19 = vand.u32 4294901760, %v2006_v53 }
 0x546   : > { %4209 = vmatprep.mubr.msk.f32.mxu0 %vm4684_vm8, %v4685_v7  ;;  %v2566_v6 = vsub.f32 %v5388_v57, %v2565_v59 }
 0x547   : > { %v4398_v25 = vpack.c.bf16 %v2007_v19, %v2000_v60  ;;  %v2484_v19 = vand.u32 4294901760, %v2456_v5 }
 0x549   : > { %v5398_v32 = vsub.f32 %v2456_v5, %v2484_v19 }
 0x5fc   : > { %v1485_v20 = vpop.f32.mrb[0].mxu1 }
 0x5fd   : > { %v4023_v17 = vpop.f32.mrb[1].mxu1  ;;  %v1486_v21 = vadd.f32 %v4764_v0, %v1485_v20  ;;  %v2450_v0 = vld [vmem:[%s5535_s7] sm:$0xff]  ;;  %v2593_v20 = vand.u32 4294901760, %v5398_v32 }
 0x5fe   : > { %v2600_v17 = vand.u32 4294901760, %v5400_v58 }
 0x618   : > { %v1891_v24 = vpop.f32.mrb[0].mxu0 }
 0x619   : > { %v4564_v27 = vadd.f32 %v1891_v24, %v1486_v21  ;;  %v4078_v28 = vpop.f32.mrb[1].mxu0  ;;  %v2594_v24 = vsub.f32 %v5398_v32, %v2593_v20 }
 0x61b   : > { %v1895_v30 = vmax.f32 %v4564_v27, 0.0  ;;  %v2601_v27 = vsub.f32 %v5400_v58, %v2600_v17  ;;  %v2595_v28 = vand.u32 4294901760, %v2594_v24 }
 0x61d   : > { %v1910_v12 = vsel %vm1908_vm9, %v1895_v30, 0  ;;  %v2602_v30 = vand.u32 4294901760, %v2601_v27 }
 0x61e   : > { %v1985_v45 = vand.u32 4294901760, %v1910_v12 }
 0x620   : > { %v1986_v47 = vsub.f32 %v1910_v12, %v1985_v45  ;;  %v4479_v12 = vpack.c.bf16 %v2602_v30, %v2595_v28 }
 0x622   : > { %v1987_v40 = vand.u32 4294901760, %v1986_v47 }
 0x624   : > { %v1988_v33 = vsub.f32 %v1986_v47, %v1987_v40 }
 0x626   : > { %v1989_v38 = vand.u32 4294901760, %v1988_v33  ;;  %v4491_v33 = vpack.c.bf16 %v5400_v58, %v5398_v32 }
 0x628   : > { %4096 = vmatmul.mubr.f32.vlgmr.msra.gmra.mrb[2].mxu1 %v1989_v38 }
 0x629   : > { %4399 = vmatpush3.bf16.msra.mxu1 %v4398_v25  ;;  %4114 = vmatprep.mubr.msk.f32.mxu1 %vm4684_vm8, %v4685_v7 }
 0x62a   : > { %4400 = vmatprep.subr.bf16.mxu1 %v4683_v41 }
 0x62d   : > { %4402 = vmatpush3.bf16.msra.mxu1 %v4401_v31  ;;  %v5396_v31 = vpack.c.bf16 %v2487_v49, %v2484_v19 }
 0x62e   : > { %4403 = vmatprep.subr.bf16.mxu1 %v4683_v41 }
 0x631   : > { %4405 = vmatpush3.bf16.msra.mxu1 %v4404_v61  ;;  %v2572_v61 = vand.u32 4294901760, %v5390_v63 }
 0x632   : > { %4406 = vmatprep.subr.bf16.mxu1 %v4683_v41 }
 0x633   : > { %v2573_v2 = vsub.f32 %v5390_v63, %v2572_v61 }
 0x635   : > { %4408 = vmatpush3.bf16.msra.mxu1 %v4407_v9  ;;  %v2567_v9 = vand.u32 4294901760, %v2566_v6 }
 0x636   : > { %4409 = vmatprep.subr.bf16.mxu1 %v4683_v41 }
 0x638   : > { %4115 = vmatmul.mubr.f32.vlgmr.msra.gmra.mrb[2].mxu1 %v1985_v45 }
 0x639   : > { %4411 = vmatpush3.bf16.msra.mxu1 %v4410_v14  ;;  %4133 = vmatprep.mubr.msk.f32.mxu1 %vm4684_vm8, %v4685_v7  ;;  %v2574_v14 = vand.u32 4294901760, %v2573_v2 }
 0x63a   : > { %4412 = vmatprep.subr.bf16.mxu1 %v4683_v41 }
 0x63d   : > { %4414 = vmatpush3.bf16.msra.mxu1 %v4413_v22  ;;  %v2579_v22 = vand.u32 4294901760, %v5392_v4 }
 0x63e   : > { %4415 = vmatprep.subr.bf16.mxu1 %v4683_v41 }
 0x641   : > { %4417 = vmatpush3.bf16.msra.mxu1 %v4416_v15 }
 0x642   : > { %4418 = vmatprep.subr.bf16.mxu1 %v4683_v41 }
 0x645   : > { %4420 = vmatpush3.bf16.msra.mxu1 %v4419_v18  ;;  %v4473_v18 = vpack.c.bf16 %v2574_v14, %v2567_v9 }
 0x646   : > { %4421 = vmatprep.subr.bf16.mxu1 %v4683_v41 }
 0x648   : > { %4134 = vmatmul.mubr.f32.vlgmr.msra.gmra.mrb[2].mxu1 %v1986_v47  ;;  %v4485_v47 = vpack.c.bf16 %v5390_v63, %v5388_v57 }
 0x649   : > { %4423 = vmatpush3.bf16.msra.mxu1 %v5228_v23  ;;  %4152 = vmatprep.mubr.msk.f32.mxu1 %vm4684_vm8, %v4685_v7 }
 0x64a   : > { %4424 = vmatprep.subr.bf16.mxu1 %v4683_v41 }
 0x64d   : > { %4426 = vmatpush3.bf16.msra.mxu1 %v5238_v43 }
 0x64e   : > { %4427 = vmatprep.subr.bf16.mxu1 %v4683_v41 }
 0x651   : > { %4429 = vmatpush3.bf16.msra.mxu1 %v5252_v29 }
 0x652   : > { %4430 = vmatprep.subr.bf16.mxu1 %v4683_v41 }
 0x655   : > { %4432 = vmatpush3.bf16.msra.mxu1 %v5272_v62 }
 0x656   : > { %4433 = vmatprep.subr.bf16.mxu1 %v4683_v41 }
 0x658   : > { %4153 = vmatmul.mubr.f32.vlgmr.msra.gmra.mrb[2].mxu1 %v1987_v40 }
 0x659   : > { %4435 = vmatpush3.bf16.msra.mxu1 %v4434_v34  ;;  %4171 = vmatprep.mubr.msk.f32.mxu1 %vm4684_vm8, %v4685_v7  ;;  %v2580_v34 = vsub.f32 %v5392_v4, %v2579_v22 }
 0x65a   : > { %4436 = vmatprep.subr.bf16.mxu1 %v4683_v41 }
 0x65d   : > { %4438 = vmatpush3.bf16.msra.mxu1 %v4437_v10 }
 0x65e   : > { %4439 = vmatprep.subr.bf16.mxu1 %v4683_v41 }
 0x661   : > { %4441 = vmatpush3.bf16.msra.mxu1 %v4440_v13  ;;  %v2581_v13 = vand.u32 4294901760, %v2580_v34 }
 0x662   : > { %4442 = vmatprep.subr.bf16.mxu1 %v4683_v41 }
 0x665   : > { %4444 = vmatpush3.bf16.msra.mxu1 %v4443_v16 }
 0x666   : > { %4445 = vmatprep.subr.bf16.mxu1 %v4683_v41 }
 0x668   : > { %4172 = vmatmul.mubr.f32.vlgmr.msra.gmra.mrb[2].mxu1 %v1985_v45 }
 0x669   : > { %4447 = vmatpush3.bf16.msra.mxu1 %v5228_v23  ;;  %4190 = vmatprep.mubr.msk.f32.mxu1 %vm4684_vm8, %v4685_v7  ;;  %v2451_v23 = vld [vmem:[%s5535_s7 + $0x8] sm:$0xff] }
 0x66a   : > { %4448 = vmatprep.subr.bf16.mxu1 %v4683_v41 }
 0x66d   : > { %4450 = vmatpush3.bf16.msra.mxu1 %v5238_v43  ;;  %v2466_v43 = vand.u32 4294901760, %v2450_v0 }
 0x66e   : > { %4451 = vmatprep.subr.bf16.mxu1 %v4683_v41 }
 0x66f   : > { %v5372_v11 = vsub.f32 %v2450_v0, %v2466_v43  ;;  %v4509_v0 = vpack.c.bf16 %v2572_v61, %v2565_v59 }
 0x671   : > { %4453 = vmatpush3.bf16.msra.mxu1 %v5252_v29  ;;  %v2469_v29 = vand.u32 4294901760, %v2451_v23  ;;  %v2551_v52 = vand.u32 4294901760, %v5372_v11 }
 0x672   : > { %4454 = vmatprep.subr.bf16.mxu1 %v4683_v41 }
 0x673   : > { %v5352_v35 = vpack.c.bf16 %v2469_v29, %v2466_v43  ;;  %v5374_v53 = vsub.f32 %v2451_v23, %v2469_v29  ;;  %v2552_v51 = vsub.f32 %v5372_v11, %v2551_v52  ;;  %v4515_v43 = vpack.c.bf16 %v2600_v17, %v2593_v20  ;;  %v3056_v29 = vld [vmem:[%s5538_s10] sm:$0xff] }
 0x674   : > { %3058 = vrot.lane.b32.xlu1 %v3056_v29, %s4688_s12 }
 0x675   : > { %4456 = vmatpush3.bf16.msra.mxu1 %v5272_v62  ;;  %4459 = vmatpush3.bf16.msra.mxu0 %v5352_v35  ;;  %v2455_v62 = vld [vmem:[%s5535_s7 + $0x28] sm:$0xff]  ;;  %v2558_v25 = vand.u32 4294901760, %v5374_v53  ;;  %v2553_v36 = vand.u32 4294901760, %v2552_v51 }
 0x676   : > { %4529 = vmatprep.subr.bf16.mxu1 %v4683_v41  ;;  %4460 = vmatprep.subr.bf16.mxu0 %v4683_v41  ;;  %v2481_v55 = vand.u32 4294901760, %v2455_v62 }
 0x677   : > { %v2559_v54 = vsub.f32 %v5374_v53, %v2558_v25  ;;  %v4506_v38 = vpack.c.bf16 %v2558_v25, %v2551_v52 }
 0x678   : > { %4191 = vmatmul.mubr.f32.vlgmr.msra.gmra.mrb[2].mxu1 %v1985_v45  ;;  %v5376_v60 = vpack.c.bf16 %v2481_v55, %v2478_v48  ;;  %v5394_v26 = vsub.f32 %v2455_v62, %v2481_v55  ;;  %v4482_v45 = vpack.c.bf16 %v5374_v53, %v5372_v11 }
 0x679   : > { %4311 = vmatprep.mubr.msk.f32.mxu1 %vm4684_vm8, %v4685_v7  ;;  %4462 = vmatpush3.bf16.msra.mxu0 %v5362_v37  ;;  %v2560_v3 = vand.u32 4294901760, %v2559_v54 }
 0x67a   : > { %4463 = vmatprep.subr.bf16.mxu0 %v4683_v41  ;;  %v2586_v15 = vand.u32 4294901760, %v5394_v26  ;;  %v4488_v40 = vpack.c.bf16 %v5394_v26, %v5392_v4 }
 0x67b   : > { %v4470_v8 = vpack.c.bf16 %v2560_v3, %v2553_v36 }
 0x67c   : > { %v2587_v10 = vsub.f32 %v5394_v26, %v2586_v15  ;;  %v4512_v23 = vpack.c.bf16 %v2586_v15, %v2579_v22 }
 0x67d   : > { %4465 = vmatpush3.bf16.msra.mxu0 %v5376_v60 }
 0x67e   : > { %4466 = vmatprep.subr.bf16.mxu0 %v4683_v41  ;;  %v2588_v16 = vand.u32 4294901760, %v2587_v10 }
 0x680   : > { %v4476_v21 = vpack.c.bf16 %v2588_v16, %v2581_v13 }
 0x681   : > { %4468 = vmatpush3.bf16.msra.mxu0 %v5396_v31 }
 0x682   : > { %4469 = vmatprep.subr.bf16.mxu0 %v4683_v41 }
 0x74b   : > { %v2445_v46 = vpop.f32.mrb[2].mxu1 }
 0x74c   : > { %v4565_v39 = vadd.f32 %v2445_v46, %v1906_v50  ;;  %v4192_v42 = vpop.f32.mrb[3].mxu1 }
 0x74e   : > { %v2449_v44 = vmax.f32 %v4565_v39, 0.0 }
 0x750   : > { %v2463_v62 = vsel %vm1908_vm9, %v2449_v44, 0 }
 0x751   : > { %v2538_v48 = vand.u32 4294901760, %v2463_v62 }
 0x753   : > { %v2539_v55 = vsub.f32 %v2463_v62, %v2538_v48 }
 0x755   : > { %v2540_v11 = vand.u32 4294901760, %v2539_v55 }
 0x757   : > { %v2541_v53 = vsub.f32 %v2539_v55, %v2540_v11 }
 0x759   : > { %v2542_v5 = vand.u32 4294901760, %v2541_v53 }
 0x75b   : > { %4210 = vmatmul.mubr.f32.vlgmr.msra.gmra.mrb[2].mxu0 %v2542_v5 }
 0x75c   : > { %4471 = vmatpush3.bf16.msra.mxu0 %v4470_v8  ;;  %4228 = vmatprep.mubr.msk.f32.mxu0 %vm4684_vm8, %v4685_v7  ;;  %v3027_v8 = vpop.permute.xlu0 %3026 }
 0x75d   : > { %4472 = vmatprep.subr.bf16.mxu0 %v4683_v41 }
 0x760   : > { %4474 = vmatpush3.bf16.msra.mxu0 %v4473_v18  ;;  %v3059_v18 = vpop.permute.xlu1 %3058 }
 0x761   : > { %4475 = vmatprep.subr.bf16.mxu0 %v4683_v41 }
 0x764   : > { %4477 = vmatpush3.bf16.msra.mxu0 %v4476_v21 }
 0x765   : > { %4478 = vmatprep.subr.bf16.mxu0 %v4683_v41 }
 0x768   : > { %4480 = vmatpush3.bf16.msra.mxu0 %v4479_v12 }
 0x769   : > { %4481 = vmatprep.subr.bf16.mxu0 %v4683_v41 }
 0x76b   : > { %4229 = vmatmul.mubr.f32.vlgmr.msra.gmra.mrb[2].mxu0 %v2538_v48 }
 0x76c   : > { %4483 = vmatpush3.bf16.msra.mxu0 %v4482_v45  ;;  %4247 = vmatprep.mubr.msk.f32.mxu0 %vm4684_vm8, %v4685_v7 }
 0x76d   : > { %4484 = vmatprep.subr.bf16.mxu0 %v4683_v41 }
 0x770   : > { %4486 = vmatpush3.bf16.msra.mxu0 %v4485_v47 }
 0x771   : > { %4487 = vmatprep.subr.bf16.mxu0 %v4683_v41 }
 0x774   : > { %4489 = vmatpush3.bf16.msra.mxu0 %v4488_v40 }
 0x775   : > { %4490 = vmatprep.subr.bf16.mxu0 %v4683_v41 }
 0x778   : > { %4492 = vmatpush3.bf16.msra.mxu0 %v4491_v33 }
 0x779   : > { %4493 = vmatprep.subr.bf16.mxu0 %v4683_v41 }
 0x77b   : > { %4248 = vmatmul.mubr.f32.vlgmr.msra.gmra.mrb[2].mxu0 %v2539_v55 }
 0x77c   : > { %4495 = vmatpush3.bf16.msra.mxu0 %v5352_v35  ;;  %4266 = vmatprep.mubr.msk.f32.mxu0 %vm4684_vm8, %v4685_v7 }
 0x77d   : > { %4496 = vmatprep.subr.bf16.mxu0 %v4683_v41 }
 0x780   : > { %4498 = vmatpush3.bf16.msra.mxu0 %v5362_v37 }
 0x781   : > { %4499 = vmatprep.subr.bf16.mxu0 %v4683_v41 }
 0x784   : > { %4501 = vmatpush3.bf16.msra.mxu0 %v5376_v60 }
 0x785   : > { %4502 = vmatprep.subr.bf16.mxu0 %v4683_v41 }
 0x788   : > { %4504 = vmatpush3.bf16.msra.mxu0 %v5396_v31 }
 0x789   : > { %4505 = vmatprep.subr.bf16.mxu0 %v4683_v41 }
 0x78b   : > { %4267 = vmatmul.mubr.f32.vlgmr.msra.gmra.mrb[2].mxu0 %v2540_v11 }
 0x78c   : > { %4507 = vmatpush3.bf16.msra.mxu0 %v4506_v38  ;;  %4285 = vmatprep.mubr.msk.f32.mxu0 %vm4684_vm8, %v4685_v7 }
 0x78d   : > { %4508 = vmatprep.subr.bf16.mxu0 %v4683_v41 }
 0x790   : > { %4510 = vmatpush3.bf16.msra.mxu0 %v4509_v0 }
 0x791   : > { %4511 = vmatprep.subr.bf16.mxu0 %v4683_v41 }
 0x794   : > { %4513 = vmatpush3.bf16.msra.mxu0 %v4512_v23 }
 0x795   : > { %4514 = vmatprep.subr.bf16.mxu0 %v4683_v41 }
 0x798   : > { %4516 = vmatpush3.bf16.msra.mxu0 %v4515_v43 }
 0x799   : > { %4517 = vmatprep.subr.bf16.mxu0 %v4683_v41 }
 0x79b   : > { %4286 = vmatmul.mubr.f32.vlgmr.msra.gmra.mrb[2].mxu0 %v2538_v48 }
 0x79c   : > { %4519 = vmatpush3.bf16.msra.mxu0 %v5352_v35  ;;  %4304 = vmatprep.mubr.msk.f32.mxu0 %vm4684_vm8, %v4685_v7 }
 0x79d   : > { %4520 = vmatprep.subr.bf16.mxu0 %v4683_v41 }
 0x7a0   : > { %4522 = vmatpush3.bf16.msra.mxu0 %v5362_v37 }
 0x7a1   : > { %4523 = vmatprep.subr.bf16.mxu0 %v4683_v41 }
 0x7a4   : > { %4525 = vmatpush3.bf16.msra.mxu0 %v5376_v60 }
 0x7a5   : > { %4526 = vmatprep.subr.bf16.mxu0 %v4683_v41 }
 0x7a8   : > { %4528 = vmatpush3.bf16.msra.mxu0 %v5396_v31 }
 0x7ab   : > { %4305 = vmatmul.mubr.f32.vlgmr.msra.gmra.mrb[2].mxu0 %v2538_v48 }
 0x87e   : > { %v2998_v56 = vpop.f32.mrb[2].mxu0 }
 0x87f   : > { %v4566_v35 = vadd.f32 %v4769_v1, %v2998_v56  ;;  %v4306_v19 = vpop.f32.mrb[3].mxu0  ;;  %v3078_v56 = vld [vmem:[%s5536_s8] sm:$0xff] }
 0x880   : > { %v3084_v19 = vand.u32 4294901760, %v3078_v56 }
 0x881   : > { %v3031_v49 = vsel %vm3030_vm10, %v4566_v35, 0.0  ;;  %v3003_v13 = vsel %vm3002_vm11, %v4566_v35, 0.0 }
 0x882   : > { %v3032_v52 = vrot.slane %v3031_v49, 4  ;;  %v3004_v16 = vrot.slane %v3003_v13, 4 }
 0x884   : > { %v3033_v25 = vadd.f32 %v3032_v52, %v3031_v49  ;;  %v3005_v20 = vadd.f32 %v3004_v16, %v3003_v13 }
 0x886   : > { %v3034_v57 = vrot.slane %v3033_v25, 2  ;;  %v3006_v17 = vrot.slane %v3005_v20, 2 }
 0x888   : > { %v3035_v63 = vadd.f32 %v3034_v57, %v3033_v25  ;;  %v3007_v21 = vadd.f32 %v3006_v17, %v3005_v20 }
 0x88a   : > { %v3036_v37 = vrot.slane %v3035_v63, 1  ;;  %v3008_v24 = vrot.slane %v3007_v21, 1 }
 0x88c   : > { %v3037_v4 = vadd.f32 %v3036_v37, %v3035_v63  ;;  %v3009_v27 = vadd.f32 %v3008_v24, %v3007_v21 }
 0x88e   : > { %v3038_v26 = vmul.f32 0.125, %v3037_v4  ;;  %v3011_v28 = vmul.f32 0.125, %v3009_v27 }
 0x890   : > { %v3039_v32 = vsub.f32 %v4566_v35, %v3038_v26  ;;  %v3012_v30 = vsub.f32 %v4566_v35, %v3011_v28  ;;  %v3079_v35 = vld [vmem:[%s5536_s8 + $0x8] sm:$0xff] }
 0x891   : > { %v3087_v49 = vand.u32 4294901760, %v3079_v35 }
 0x892   : > { %v3040_v60 = vmul.f32 %v3039_v32, %v3039_v32  ;;  %v3013_v12 = vmul.f32 %v3012_v30, %v3012_v30 }
 0x893   : > { %v4530_v52 = vpack.c.bf16 %v3087_v49, %v3084_v19  ;;  %v3169_v25 = vsub.f32 %v3079_v35, %v3087_v49 }
 0x894   : > { %v3041_v58 = vsel %vm3030_vm10, %v3040_v60, 0.0  ;;  %v3014_v45 = vsel %vm3002_vm11, %v3013_v12, 0.0 }
 0x895   : > { %v3042_v51 = vrot.slane %v3041_v58, 4  ;;  %v3015_v47 = vrot.slane %v3014_v45, 4  ;;  %4531 = vmatpush3.bf16.msra.mxu1 %v4530_v52  ;;  %v3170_v63 = vand.u32 4294901760, %v3169_v25 }
 0x896   : > { %4532 = vmatprep.subr.bf16.mxu1 %v4683_v41 }
 0x897   : > { %v3043_v54 = vadd.f32 %v3042_v51, %v3041_v58  ;;  %v3016_v40 = vadd.f32 %v3015_v47, %v3014_v45  ;;  %v3171_v4 = vsub.f32 %v3169_v25, %v3170_v63 }
 0x899   : > { %v3044_v31 = vrot.slane %v3043_v54, 2  ;;  %v3017_v33 = vrot.slane %v3016_v40, 2 }
 0x89b   : > { %v3045_v36 = vadd.f32 %v3044_v31, %v3043_v54  ;;  %v3018_v38 = vadd.f32 %v3017_v33, %v3016_v40 }
 0x89d   : > { %v3046_v59 = vrot.slane %v3045_v36, 1  ;;  %v3019_v0 = vrot.slane %v3018_v38, 1 }
 0x89f   : > { %v3047_v61 = vadd.f32 %v3046_v59, %v3045_v36  ;;  %v3020_v23 = vadd.f32 %v3019_v0, %v3018_v38 }
 0x8a1   : > { %v3048_v3 = vmul.f32 0.125, %v3047_v61  ;;  %v3021_v43 = vmul.f32 0.125, %v3020_v23 }
 0x8a3   : > { %v3049_v6 = vadd.f32 1e-05, %v3048_v3  ;;  %v3022_v29 = vadd.f32 1e-05, %v3021_v43 }
 0x8a5   : > { %4629 = vrsqrt.f32 %v3049_v6 }
 0x8af   : > { %v4630_v2 = vpop.eup %4629 }
 0x8b0   : > { %v3051_v9 = vmul.f32 %v4630_v2, %v3039_v32  ;;  %v3172_v32 = vand.u32 4294901760, %v3171_v4 }
 0x8b2   : > { %v3052_v14 = vadd.f32 %v3051_v9, %v3027_v8 }
 0x8b4   : > { %v3053_v22 = vmul.f32 0.5, %v3052_v14 }
 0x8b6   : > { %v3054_v15 = vmul.f32 1.442695, %v3053_v22 }
 0x8b8   : > { %4631 = vpow2.f32 %v3054_v15 }
 0x8b9   : > { %4633 = vrsqrt.f32 %v3022_v29 }
 0x8c2   : > { %v4632_v34 = vpop.eup %4631 }
 0x8c3   : > { %v3061_v10 = vmul.f32 %v4632_v34, %v3059_v18  ;;  %v4634_v50 = vpop.eup %4633 }
 0x8c4   : > { %v3024_v46 = vmul.f32 %v4634_v50, %v3012_v30 }
 0x8c5   : > { %3063 = vrot.lane.b32.xlu1 %v3061_v10, %s4689_s14 }
 0x8c6   : > { %v3029_v39 = vadd.f32 %v3027_v8, %v3024_v46 }
 0x937   : > { %v3064_v42 = vpop.permute.xlu1 %3063 }
 0x938   : > { %v3066_v44 = vadd.f32 %v3064_v42, %v3029_v39 }
 0x93a   : > { %v3067_v62 = vsel %vm3002_vm11, %v3066_v44, -inf }
 0x93b   : > { %3068 = vmax.xlane.f32.xlu0 %v3067_v62 }
 0x951   : > { %3563 = vrot.lane.b32.xlu0 %v4769_v1, %s4686_s27  ;;  %v3162_v1 = vsub.f32 %v3078_v56, %v3084_v19 }
 0x953   : > { %v3163_v57 = vand.u32 4294901760, %v3162_v1  ;;  %v4536_v58 = vpack.c.bf16 %v3169_v25, %v3162_v1 }
 0x955   : > { %v3164_v37 = vsub.f32 %v3162_v1, %v3163_v57  ;;  %v4542_v51 = vpack.c.bf16 %v3170_v63, %v3163_v57 }
 0x957   : > { %v3165_v26 = vand.u32 4294901760, %v3164_v37 }
 0x959   : > { %v4533_v60 = vpack.c.bf16 %v3172_v32, %v3165_v26 }
 0x9c8   : > { %v3069_v48 = vpop.xlane.xlu0 %3068 }
 0x9c9   : > { %v3070_v55 = vsub.f32 %v3066_v44, %v3069_v48 }
 0x9cb   : > { %v3071_v11 = vmul.f32 1.442695, %v3070_v55 }
 0x9cc   : > { %v3564_v33 = vpop.permute.xlu0 %3563 }
 0x9cd   : > { %4635 = vpow2.f32 %v3071_v11 }
 0x9d7   : > { %v4636_v53 = vpop.eup %4635 }
 0x9d8   : > { %v3073_v5 = vsel %vm3002_vm11, %v4636_v53, 0.0 }
 0x9d9   : > { %3074 = vadd.xlane.f32.xlu1 %v3073_v5 }
 0xa66   : > { %v3075_v54 = vpop.xlane.xlu1 %3074 }
 0xa67   : > { %4637 = vrcp.f32 %v3075_v54 }
 0xa71   : > { %v4638_v31 = vpop.eup %4637 }
 0xa72   : > { %v3077_v36 = vmul.f32 %v4638_v31, %v4636_v53 }
 0xa74   : > { %v3081_v59 = vsel %vm3002_vm11, %v3077_v36, 0 }
 0xa75   : > { %v3150_v61 = vand.u32 4294901760, %v3081_v59 }
 0xa77   : > { %v3151_v3 = vsub.f32 %v3081_v59, %v3150_v61 }
 0xa79   : > { %v3152_v6 = vand.u32 4294901760, %v3151_v3 }
 0xa7b   : > { %v3153_v2 = vsub.f32 %v3151_v3, %v3152_v6 }
 0xa7d   : > { %v3154_v8 = vand.u32 4294901760, %v3153_v2 }
 0xa7f   : > { %4312 = vmatmul.mubr.f32.vlgmr.msra.gmra.mrb[4].mxu1 %v3154_v8 }
 0xa80   : > { %4534 = vmatpush3.bf16.msra.mxu1 %v4533_v60  ;;  %4318 = vmatprep.mubr.msk.f32.mxu1 %vm4684_vm8, %v4685_v7 }
 0xa81   : > { %4535 = vmatprep.subr.bf16.mxu1 %v4683_v41 }
 0xa87   : > { %4319 = vmatmul.mubr.f32.vlgmr.msra.gmra.mrb[4].mxu1 %v3150_v61 }
 0xa88   : > { %4537 = vmatpush3.bf16.msra.mxu1 %v4536_v58  ;;  %4325 = vmatprep.mubr.msk.f32.mxu1 %vm4684_vm8, %v4685_v7 }
 0xa89   : > { %4538 = vmatprep.subr.bf16.mxu1 %v4683_v41 }
 0xa8f   : > { %4326 = vmatmul.mubr.f32.vlgmr.msra.gmra.mrb[4].mxu1 %v3151_v3 }
 0xa90   : > { %4540 = vmatpush3.bf16.msra.mxu1 %v4530_v52  ;;  %4332 = vmatprep.mubr.msk.f32.mxu1 %vm4684_vm8, %v4685_v7 }
 0xa91   : > { %4541 = vmatprep.subr.bf16.mxu1 %v4683_v41 }
 0xa97   : > { %4333 = vmatmul.mubr.f32.vlgmr.msra.gmra.mrb[4].mxu1 %v3152_v6 }
 0xa98   : > { %4543 = vmatpush3.bf16.msra.mxu1 %v4542_v51  ;;  %4339 = vmatprep.mubr.msk.f32.mxu1 %vm4684_vm8, %v4685_v7 }
 0xa99   : > { %4544 = vmatprep.subr.bf16.mxu1 %v4683_v41 }
 0xa9f   : > { %4340 = vmatmul.mubr.f32.vlgmr.msra.gmra.mrb[4].mxu1 %v3150_v61 }
 0xaa0   : > { %4546 = vmatpush3.bf16.msra.mxu1 %v4530_v52  ;;  %4346 = vmatprep.mubr.msk.f32.mxu1 %vm4684_vm8, %v4685_v7 }
 0xaa7   : > { %4347 = vmatmul.mubr.f32.vlgmr.msra.gmra.mrb[4].mxu1 %v3150_v61 }
 0xb7a   : > { %v3538_v9 = vpop.f32.mrb[4].mxu1 }
 0xb7b   : > { %v3542_v14 = vsel %vm466_vm0, %v3538_v9, 0.0  ;;  %v4348_v22 = vpop.f32.mrb[5].mxu1 }
 0xb7c   : > { %v3543_v15 = vrot.slane %v3542_v14, 4 }
 0xb7e   : > { %v3544_v18 = vadd.f32 %v3543_v15, %v3542_v14 }
 0xb80   : > { %v3545_v34 = vrot.slane %v3544_v18, 2 }
 0xb82   : > { %v3546_v10 = vadd.f32 %v3545_v34, %v3544_v18 }
 0xb84   : > { %v3547_v13 = vrot.slane %v3546_v10, 1 }
 0xb86   : > { %v3548_v16 = vadd.f32 %v3547_v13, %v3546_v10 }
 0xb88   : > { %v3549_v20 = vmul.f32 0.125, %v3548_v16 }
 0xb8a   : > { %v3550_v17 = vsub.f32 %v3538_v9, %v3549_v20 }
 0xb8c   : > { %v3551_v21 = vmul.f32 %v3550_v17, %v3550_v17 }
 0xb8e   : > { %v3552_v41 = vsel %vm466_vm0, %v3551_v21, 0.0 }
 0xb8f   : > { %v3553_v24 = vrot.slane %v3552_v41, 4 }
 0xb91   : > { %v3554_v27 = vadd.f32 %v3553_v24, %v3552_v41 }
 0xb93   : > { %v3555_v28 = vrot.slane %v3554_v27, 2 }
 0xb95   : > { %v3556_v7 = vadd.f32 %v3555_v28, %v3554_v27 }
 0xb97   : > { %v3557_v30 = vrot.slane %v3556_v7, 1 }
 0xb99   : > { %v3558_v12 = vadd.f32 %v3557_v30, %v3556_v7 }
 0xb9b   : > { %v3559_v45 = vmul.f32 0.125, %v3558_v12 }
 0xb9d   : > { %v3560_v47 = vadd.f32 1e-05, %v3559_v45 }
 0xb9f   : > { %4639 = vrsqrt.f32 %v3560_v47 }
 0xba9   : > { %v4640_v40 = vpop.eup %4639 }
 0xbaa   : > { %v3562_v38 = vmul.f32 %v4640_v40, %v3550_v17 }
 0xbac   : > { %v3566_v0 = vadd.f32 %v3564_v33, %v3562_v38 }
 0xbae   : > { %v3567_v23 = vsel %vm466_vm0, %v3566_v0, -inf }
 0xbaf   : > { %3568 = vmax.xlane.f32.xlu1 %v3567_v23 }
 0xc3c   : > { %v3569_v43 = vpop.xlane.xlu1 %3568 }
 0xc3d   : > { %v3570_v29 = vsub.f32 %v3566_v0, %v3569_v43 }
 0xc3f   : > { %v3571_v50 = vmul.f32 1.442695, %v3570_v29 }
 0xc41   : > { %4641 = vpow2.f32 %v3571_v50 }
 0xc4b   : > { %v4642_v46 = vpop.eup %4641 }
 0xc4c   : > { %v3573_v39 = vsel %vm466_vm0, %v4642_v46, 0.0 }
 0xc4d   : > { %3574 = vadd.xlane.f32.xlu1 %v3573_v39 }
 0xcda   : > { %v3575_v42 = vpop.xlane.xlu1 %3574 }
 0xcdb   : > { %4643 = vrcp.f32 %v3575_v42 }
 0xce5   : > { %v4644_v44 = vpop.eup %4643 }
 0xce6   : > { %v3577_v62 = vmul.f32 %v4644_v44, %v4642_v46 }
 0xce8   : > { %3578 = vst.msk [vmem:[#allocation3] sm:$0xff] %vm466_vm0, %v3577_v62 }
 0xce9 PF: > { %p4611_p5 = scmp.eq.s32.totalorder %s4757_s18, 1  ;;  %s4690_s27 = smov [#allocation3]  }
 0xcea   : > { %s3586_s20 = sshll.u32 %s4690_s27, 4  ;;  %s3587_s20 = int_to_ptr.vmem [resolvable:$true] %s3586_s20 }
 0xceb   : > { %s4645_s21 = scalar_lea.vmem %s3587_s20, 128  ;;  %p4652_p9 = scmp.lt.s32.totalorder %s3587_s20, %s3587_s20 }
 0xcec   : > { %p4646_p6 = scmp.ne.s32.totalorder %s3587_s20, %s4645_s21  ;;  %p4653_p10 = scmp.lt.s32.totalorder %s4645_s21, %s4645_s21 }
 0xcee   : > { %p4647_p7 = pnand %p4646_p6, %p4611_p5  ;;  %p4654_p11 = por %p4653_p10, %p4652_p9 }
 0xcf0   : > { %p4648_p8 = pneg %p4647_p7 }
 0xcf2   : > { %p4655_p12 = pnand %p4654_p11, %p4648_p8 }
 0xcf4   : > { %4658 = shalt.err (!%p4655_p12)
}
 0xcf5   : > { %s4659_s24 = scalar_lea.hbm %s5539_s11, 128 }
 0xcf6   : > { %p4660_p13 = scmp.ne.s32.totalorder %s5539_s11, %s4659_s24  ;;  %p4665_p2 = scmp.lt.u32.totalorder %s4659_s24, %s5539_s11 }
 0xcf8   : > { %p4661_p0 = pnand %p4660_p13, %p4611_p5 }
 0xcfa   : > { %p4662_p1 = pneg %p4661_p0 }
 0xcfc   : > { %p4667_p3 = pnand %p4665_p2, %p4662_p1 }
 0xcfe   : > { %4670 = shalt.err (!%p4667_p3)
}
 0xcff   : > { %4608 = dma.vmem_to_hbm [thread:$0]  (%p4611_p5), %s3587_s20, 128, %s5539_s11, [#allocation4]  }
 0xd00   : > { %4676 = dma.done.wait (%p4611_p5), [#allocation4], 128  }
 0xd01   : > { %4678 = vsyncadd (%p4611_p5), [#allocation4], 4294967168 }
 0xd02 PF: > { %s22_s17 = sadd.s32 1, %s4681_s17  }
 0xd03   : > { %p19_p4 = scmp.ge.s32.totalorder %s22_s17, 4  }
 0xd05   :  { %21 = sbr.rel (!%p19_p4) target bundleno = 1 (0x1), region = 102 }
 0xd0c   :  { %3599 = vsyncpa [#allocation4], 1 }
 0xd0d   :  { %3601 = vsyncpa [#allocation4 + $0x1], 1 }

</bundles_post_ra>
